<compile_context>
chip_gen: v7x
topology: tpu7x:2x2x1
jax: 0.10.0
libtpu: 0.0.40
codegen_flags: <defaults>
</compile_context>

<pallas_src>
import functools

import jax
import jax.numpy as jnp
from jax import lax
from jax.experimental import pallas as pl
from jax.experimental.pallas import tpu as pltpu


def _round_up(x, m):
    return (x + m - 1) // m * m


def _vqvae_kernel(x_ref, w1_ref, b1_ref, w2_ref, b2_ref, emb_ref, emb_sq_ref,
                  w3_ref, b3_ref, w4_ref, b4_ref,
                  loss_ref, recon_ref, perp_ref,
                  sse_acc, cnt_acc,
                  *, commitment_cost, batch_size, tile_rows, n_elems):
    f32 = jnp.float32
    i = pl.program_id(0)

    @pl.when(i == 0)
    def _init():
        sse_acc[...] = jnp.zeros_like(sse_acc)
        cnt_acc[...] = jnp.zeros_like(cnt_acc)

    # ---------------- Encoder: Linear -> ReLU -> Linear ----------------
    x = x_ref[...].astype(f32)                                               # [TB, Din]
    h1 = jnp.dot(x, w1_ref[...], preferred_element_type=f32) + b1_ref[...]
    h1 = jnp.maximum(h1, 0.0)
    z = jnp.dot(h1, w2_ref[...], preferred_element_type=f32) + b2_ref[...]   # [TB, D]

    # ---------------- Vector quantizer ----------------
    emb = emb_ref[...]                                                       # [K, D]
    dot = jnp.dot(z, emb.T, preferred_element_type=f32)                      # [TB, K]
    # ||z||^2 is constant per row -> dropped (does not change the argmin).
    # Codebook norms are precomputed in the wrapper; padded codes carry a huge
    # norm so they can never win the argmin.
    d = emb_sq_ref[...] - 2.0 * dot                                          # [TB, K]

    TB, K = d.shape
    iota = lax.broadcasted_iota(jnp.int32, (TB, K), 1)
    min_d = jnp.min(d, axis=1, keepdims=True)
    enc_idx = jnp.min(jnp.where(d == min_d, iota, K), axis=1, keepdims=True)  # first idx on ties
    encodings = (iota == enc_idx).astype(f32)                                # [TB, K] one-hot

    quantized = jnp.dot(encodings, emb, preferred_element_type=f32)          # [TB, D]

    # rows beyond the real batch are zero-padding: mask them out of the reductions
    row = i * tile_rows + lax.broadcasted_iota(jnp.int32, (TB, 1), 0)
    valid = (row < batch_size).astype(f32)                                   # [TB, 1]

    diff = quantized - z
    row_sse = jnp.sum(diff * diff, axis=1, keepdims=True)                    # [TB, 1]
    sse_acc[...] += jnp.sum(row_sse * valid, axis=0, keepdims=True)          # (1, 1)
    cnt_acc[...] += jnp.sum(encodings * valid, axis=0, keepdims=True)        # (1, K)

    # straight-through estimator: forward value of quantized is `quantized`
    # ---------------- Decoder: Linear -> ReLU -> Linear ----------------
    h2 = jnp.dot(quantized, w3_ref[...], preferred_element_type=f32) + b3_ref[...]
    h2 = jnp.maximum(h2, 0.0)
    recon_ref[...] = (jnp.dot(h2, w4_ref[...], preferred_element_type=f32)
                      + b4_ref[...]).astype(recon_ref.dtype)

    # ---------------- Finalize scalars on the last tile ----------------
    @pl.when(i == pl.num_programs(0) - 1)
    def _finalize():
        mse = sse_acc[...] / jnp.float32(n_elems)                            # (1, 1)
        loss_ref[...] = (1.0 + commitment_cost) * mse
        avg_p = cnt_acc[...] / jnp.float32(batch_size)                       # (1, K)
        neg_ent = -jnp.sum(avg_p * jnp.log(avg_p + 1e-10), axis=1, keepdims=True)
        perp_ref[...] = jnp.exp(neg_ent)


def vq_vae_forward(x, params, *, commitment_cost, tile_rows=None):
    """x: [B, input_dim] float32. params: dict of weights (see init_params)."""
    B, input_dim = x.shape
    K, D = params["embedding"].shape
    hidden = params["w1"].shape[1]

    # Pad every feature dim to a 128-lane multiple. Zero padding is exact here:
    # padded weight rows/cols and bias entries contribute 0, padded z/quantized
    # columns are exactly 0, padded codes get a huge norm (never selected).
    din_p = _round_up(input_dim, 128)
    h_p = _round_up(hidden, 128)
    d_p = _round_up(D, 128)
    k_p = _round_up(K, 128)

    if tile_rows is None:
        tile_rows = 256 if B >= 256 else _round_up(B, 8)
    tb = int(tile_rows)
    b_p = _round_up(B, tb)
    grid = (b_p // tb,)

    def pad2(a, rows, cols):
        a = jnp.asarray(a, jnp.float32)
        return jnp.pad(a, ((0, rows - a.shape[0]), (0, cols - a.shape[1])))

    xp = pad2(x, b_p, din_p)
    w1 = pad2(params["w1"], din_p, h_p)
    b1 = pad2(params["b1"], 1, h_p)
    w2 = pad2(params["w2"], h_p, d_p)
    b2 = pad2(params["b2"], 1, d_p)
    emb = pad2(params["embedding"], k_p, d_p)
    emb_sq = jnp.sum(jnp.asarray(params["embedding"], jnp.float32) ** 2, axis=1)
    emb_sq = jnp.pad(emb_sq, (0, k_p - K), constant_values=1e30).reshape(1, k_p)
    w3 = pad2(params["w3"], d_p, h_p)
    b3 = pad2(params["b3"], 1, h_p)
    w4 = pad2(params["w4"], h_p, din_p)
    b4 = pad2(params["b4"], 1, din_p)

    args = (xp, w1, b1, w2, b2, emb, emb_sq, w3, b3, w4, b4)

    def resident(shape):
        # full-size block with constant index -> DMA'd once, stays in VMEM
        return pl.BlockSpec(shape, lambda i: (0, 0))

    in_specs = [
        pl.BlockSpec((tb, din_p), lambda i: (i, 0)),   # x tile (pipelined)
        resident((din_p, h_p)), resident((1, h_p)),    # w1, b1
        resident((h_p, d_p)), resident((1, d_p)),      # w2, b2
        resident((k_p, d_p)), resident((1, k_p)),      # embedding, precomputed ||e||^2
        resident((d_p, h_p)), resident((1, h_p)),      # w3, b3
        resident((h_p, din_p)), resident((1, din_p)),  # w4, b4
    ]
    out_specs = (
        pl.BlockSpec((1, 1), lambda i: (0, 0)),        # vq loss (finalized on last tile)
        pl.BlockSpec((tb, din_p), lambda i: (i, 0)),   # x_recon tile (pipelined)
        pl.BlockSpec((1, 1), lambda i: (0, 0)),        # perplexity
    )

    kernel = functools.partial(
        _vqvae_kernel,
        commitment_cost=float(commitment_cost),
        batch_size=int(B),
        tile_rows=tb,
        n_elems=int(B) * int(D),
    )

    # VMEM budget: resident weights + double-buffered x/recon tiles + working set + headroom
    weight_bytes = sum(int(a.size) * a.dtype.itemsize for a in args[1:])
    work_bytes = tb * (2 * din_p + h_p + d_p + 2 * k_p) * 4
    vmem_limit = weight_bytes + 2 * 2 * tb * din_p * 4 + 4 * work_bytes + (8 << 20)
    vmem_limit = int(min(max(vmem_limit, 16 << 20), 64 << 20))   # safe on v5e/v6e/v7x

    loss, recon, perp = pl.pallas_call(
        kernel,
        out_shape=(
            jax.ShapeDtypeStruct((1, 1), jnp.float32),
            jax.ShapeDtypeStruct((b_p, din_p), jnp.float32),
            jax.ShapeDtypeStruct((1, 1), jnp.float32),
        ),
        grid_spec=pltpu.PrefetchScalarGridSpec(
            num_scalar_prefetch=0,
            grid=grid,
            in_specs=in_specs,
            out_specs=out_specs,
            scratch_shapes=[
                pltpu.VMEM((1, 1), jnp.float32),     # SSE accumulator
                pltpu.VMEM((1, k_p), jnp.float32),   # per-code count accumulator
            ],
        ),
        compiler_params=pltpu.CompilerParams(
            dimension_semantics=("arbitrary",),      # revisited-output / accumulator pattern
            vmem_limit_bytes=vmem_limit,
        ),
    )(*args)

    return loss[0, 0], recon[:B, :input_dim], perp[0, 0]


def init_params(key, input_dim, num_embeddings, embedding_dim):
    """Deterministic synthetic init (shapes match the torch module)."""
    hidden = input_dim // 2
    ks = jax.random.split(key, 9)

    def lin(kw, fan_in, fan_out):
        bound = 1.0 / jnp.sqrt(jnp.float32(fan_in))
        return jax.random.uniform(kw, (fan_in, fan_out), jnp.float32, -bound, bound)

    return {
        "w1": lin(ks[0], input_dim, hidden),
        "b1": jax.random.uniform(ks[1], (1, hidden), jnp.float32, -0.1, 0.1),
        "w2": lin(ks[2], hidden, embedding_dim),
        "b2": jax.random.uniform(ks[3], (1, embedding_dim), jnp.float32, -0.1, 0.1),
        "embedding": jax.random.uniform(
            ks[4], (num_embeddings, embedding_dim), jnp.float32,
            -1.0 / num_embeddings, 1.0 / num_embeddings),
        "w3": lin(ks[5], embedding_dim, hidden),
        "b3": jax.random.uniform(ks[6], (1, hidden), jnp.float32, -0.1, 0.1),
        "w4": lin(ks[7], hidden, input_dim),
        "b4": jax.random.uniform(ks[8], (1, input_dim), jnp.float32, -0.1, 0.1),
    }


def _reference_forward(x, params, commitment_cost):
    """Pure-JAX reference for a sanity check."""
    h1 = jnp.maximum(x @ params["w1"] + params["b1"], 0.0)
    z = h1 @ params["w2"] + params["b2"]
    emb = params["embedding"]
    d = (jnp.sum(z**2, axis=1, keepdims=True)
         - 2.0 * z @ emb.T
         + jnp.sum(emb**2, axis=1)[None, :])
    idx = jnp.argmin(d, axis=1)
    enc = jax.nn.one_hot(idx, emb.shape[0], dtype=jnp.float32)
    q = enc @ emb
    mse = jnp.mean((q - z) ** 2)
    loss = (1.0 + commitment_cost) * mse
    avg_p = jnp.mean(enc, axis=0)
    perp = jnp.exp(-jnp.sum(avg_p * jnp.log(avg_p + 1e-10)))
    h2 = jnp.maximum(q @ params["w3"] + params["b3"], 0.0)
    recon = h2 @ params["w4"] + params["b4"]
    return loss, recon, perp


if __name__ == "__main__":
    # Small shapes consistent with the module's forward (2-D [batch, input_dim]).
    # B is intentionally NOT a tile multiple -> exercises padded-row masking;
    # TILE_ROWS=32 gives a 2-step grid -> exercises cross-tile loss/perplexity accumulation.
    B = 48
    INPUT_DIM = 32
    EMBEDDING_DIM = 8
    NUM_EMBEDDINGS = 16
    COMMITMENT_COST = 0.25
    TILE_ROWS = 32

    key = jax.random.PRNGKey(0)
    kx, kp = jax.random.split(key)
    x = jax.random.normal(kx, (B, INPUT_DIM), jnp.float32)
    params = init_params(kp, INPUT_DIM, NUM_EMBEDDINGS, EMBEDDING_DIM)

    loss, recon, perp = vq_vae_forward(
        x, params, commitment_cost=COMMITMENT_COST, tile_rows=TILE_ROWS)
    jax.block_until_ready((loss, recon, perp))

    # sanity check against a pure-JAX reference
    ref_loss, ref_recon, ref_perp = _reference_forward(x, params, COMMITMENT_COST)
    assert jnp.allclose(loss, ref_loss, atol=1e-5, rtol=1e-5), (loss, ref_loss)
    assert jnp.allclose(recon, ref_recon, atol=1e-4, rtol=1e-4)
    assert jnp.allclose(perp, ref_perp, atol=1e-4, rtol=1e-4)

    print("KERNEL_OK")
</pallas_src>

<mosaic_0001>
module attributes {stable_mosaic.version = 11 : i64} {
  func.func @_vqvae_kernel(%arg0: i32, %arg1: memref<32x128xf32, #tpu.memory_space<vmem>>, %arg2: memref<128x128xf32, #tpu.memory_space<vmem>>, %arg3: memref<1x128xf32, #tpu.memory_space<vmem>>, %arg4: memref<128x128xf32, #tpu.memory_space<vmem>>, %arg5: memref<1x128xf32, #tpu.memory_space<vmem>>, %arg6: memref<128x128xf32, #tpu.memory_space<vmem>>, %arg7: memref<1x128xf32, #tpu.memory_space<vmem>>, %arg8: memref<128x128xf32, #tpu.memory_space<vmem>>, %arg9: memref<1x128xf32, #tpu.memory_space<vmem>>, %arg10: memref<128x128xf32, #tpu.memory_space<vmem>>, %arg11: memref<1x128xf32, #tpu.memory_space<vmem>>, %arg12: memref<1x1xf32, #tpu.memory_space<vmem>>, %arg13: memref<32x128xf32, #tpu.memory_space<vmem>>, %arg14: memref<1x1xf32, #tpu.memory_space<vmem>>, %arg15: memref<1x1xf32, #tpu.memory_space<vmem>>, %arg16: memref<1x128xf32, #tpu.memory_space<vmem>>) attributes {dimension_semantics = [#tpu.dimension_semantics<arbitrary>], iteration_bounds = array<i64: 2>, scalar_prefetch = 0 : i64, scratch_operands = 2 : i64, tpu.core_type = #tpu.core_type<tc>, window_params = [{transform_indices = @transform_0, window_bounds = array<i64: 32, 128>}, {pipeline_mode = #tpu.pipeline_mode<synchronous>, transform_indices = @transform_1, window_bounds = array<i64: 128, 128>}, {pipeline_mode = #tpu.pipeline_mode<synchronous>, transform_indices = @transform_2, window_bounds = array<i64: 1, 128>}, {pipeline_mode = #tpu.pipeline_mode<synchronous>, transform_indices = @transform_3, window_bounds = array<i64: 128, 128>}, {pipeline_mode = #tpu.pipeline_mode<synchronous>, transform_indices = @transform_4, window_bounds = array<i64: 1, 128>}, {pipeline_mode = #tpu.pipeline_mode<synchronous>, transform_indices = @transform_5, window_bounds = array<i64: 128, 128>}, {pipeline_mode = #tpu.pipeline_mode<synchronous>, transform_indices = @transform_6, window_bounds = array<i64: 1, 128>}, {pipeline_mode = #tpu.pipeline_mode<synchronous>, transform_indices = @transform_7, window_bounds = array<i64: 128, 128>}, {pipeline_mode = #tpu.pipeline_mode<synchronous>, transform_indices = @transform_8, window_bounds = array<i64: 1, 128>}, {pipeline_mode = #tpu.pipeline_mode<synchronous>, transform_indices = @transform_9, window_bounds = array<i64: 128, 128>}, {pipeline_mode = #tpu.pipeline_mode<synchronous>, transform_indices = @transform_10, window_bounds = array<i64: 1, 128>}, {pipeline_mode = #tpu.pipeline_mode<synchronous>, transform_indices = @transform_11, window_bounds = array<i64: 1, 1>}, {transform_indices = @transform_12, window_bounds = array<i64: 32, 128>}, {pipeline_mode = #tpu.pipeline_mode<synchronous>, transform_indices = @transform_13, window_bounds = array<i64: 1, 1>}]} {
    %c0_i32 = arith.constant 0 : i32
    %0 = arith.cmpi eq, %arg0, %c0_i32 : i32
    %1 = arith.extui %0 : i1 to i32
    %c0_i32_0 = arith.constant 0 : i32
    %2 = arith.cmpi ne, %1, %c0_i32_0 : i32
    scf.if %2 {
      %cst_46 = arith.constant 0.000000e+00 : f32
      %79 = vector.broadcast %cst_46 : f32 to vector<1x1xf32>
      %c0_47 = arith.constant 0 : index
      %c0_48 = arith.constant 0 : index
      %80 = vector.load %arg15[%c0_47, %c0_48] : memref<1x1xf32, #tpu.memory_space<vmem>>, vector<1x1xf32>
      tpu.vector_store %arg15[%c0_47, %c0_48], %79 {strides = array<i32>} : memref<1x1xf32, #tpu.memory_space<vmem>>, vector<1x1xf32>,
      %cst_49 = arith.constant 0.000000e+00 : f32
      %81 = vector.broadcast %cst_49 : f32 to vector<1x128xf32>
      %c0_50 = arith.constant 0 : index
      %c0_51 = arith.constant 0 : index
      %82 = vector.load %arg16[%c0_50, %c0_51] : memref<1x128xf32, #tpu.memory_space<vmem>>, vector<1x128xf32>
      tpu.vector_store %arg16[%c0_50, %c0_51], %81 {strides = array<i32>} : memref<1x128xf32, #tpu.memory_space<vmem>>, vector<1x128xf32>,
    } else {
    }
    %c0 = arith.constant 0 : index
    %c0_1 = arith.constant 0 : index
    %3 = vector.load %arg1[%c0, %c0_1] : memref<32x128xf32, #tpu.memory_space<vmem>>, vector<32x128xf32>
    %c0_2 = arith.constant 0 : index
    %c0_3 = arith.constant 0 : index
    %4 = vector.load %arg2[%c0_2, %c0_3] : memref<128x128xf32, #tpu.memory_space<vmem>>, vector<128x128xf32>
    %cst = arith.constant dense<0.000000e+00> : vector<32x128xf32>
    %5 = tpu.matmul %3, %4, %cst {dimension_numbers = #tpu.dot_dimension_numbers<[1], [0], [0], [1], [0, 0, 1, 1], [], []>} : vector<32x128xf32>, vector<128x128xf32>, vector<32x128xf32> -> vector<32x128xf32>
    %c0_4 = arith.constant 0 : index
    %c0_5 = arith.constant 0 : index
    %6 = vector.load %arg3[%c0_4, %c0_5] : memref<1x128xf32, #tpu.memory_space<vmem>>, vector<1x128xf32>
    %7 = vector.broadcast %6 : vector<1x128xf32> to vector<32x128xf32>
    %8 = arith.addf %5, %7 : vector<32x128xf32>
    %cst_6 = arith.constant 0.000000e+00 : f32
    %9 = vector.broadcast %cst_6 : f32 to vector<32x128xf32>
    %10 = arith.maximumf %8, %9 : vector<32x128xf32>
    %c0_7 = arith.constant 0 : index
    %c0_8 = arith.constant 0 : index
    %11 = vector.load %arg4[%c0_7, %c0_8] : memref<128x128xf32, #tpu.memory_space<vmem>>, vector<128x128xf32>
    %cst_9 = arith.constant dense<0.000000e+00> : vector<32x128xf32>
    %12 = tpu.matmul %10, %11, %cst_9 {dimension_numbers = #tpu.dot_dimension_numbers<[1], [0], [0], [1], [0, 0, 1, 1], [], []>} : vector<32x128xf32>, vector<128x128xf32>, vector<32x128xf32> -> vector<32x128xf32>
    %c0_10 = arith.constant 0 : index
    %c0_11 = arith.constant 0 : index
    %13 = vector.load %arg5[%c0_10, %c0_11] : memref<1x128xf32, #tpu.memory_space<vmem>>, vector<1x128xf32>
    %14 = vector.broadcast %13 : vector<1x128xf32> to vector<32x128xf32>
    %15 = arith.addf %12, %14 : vector<32x128xf32>
    %c0_12 = arith.constant 0 : index
    %c0_13 = arith.constant 0 : index
    %16 = vector.load %arg6[%c0_12, %c0_13] : memref<128x128xf32, #tpu.memory_space<vmem>>, vector<128x128xf32>
    %17 = tpu.transpose %16, [1, 0] : vector<128x128xf32> -> vector<128x128xf32>
    %cst_14 = arith.constant dense<0.000000e+00> : vector<32x128xf32>
    %18 = tpu.matmul %15, %17, %cst_14 {dimension_numbers = #tpu.dot_dimension_numbers<[1], [0], [0], [1], [0, 0, 1, 1], [], []>} : vector<32x128xf32>, vector<128x128xf32>, vector<32x128xf32> -> vector<32x128xf32>
    %c0_15 = arith.constant 0 : index
    %c0_16 = arith.constant 0 : index
    %19 = vector.load %arg7[%c0_15, %c0_16] : memref<1x128xf32, #tpu.memory_space<vmem>>, vector<1x128xf32>
    %cst_17 = arith.constant 2.000000e+00 : f32
    %20 = vector.broadcast %cst_17 : f32 to vector<32x128xf32>
    %21 = arith.mulf %20, %18 : vector<32x128xf32>
    %22 = vector.broadcast %19 : vector<1x128xf32> to vector<32x128xf32>
    %23 = arith.subf %22, %21 : vector<32x128xf32>
    %24 = tpu.iota {dimensions = array<i32: 1>} : vector<32x128xi32>
    %cst_18 = arith.constant dense<0x7F800000> : vector<32xf32>
    %25 = vector.multi_reduction <minimumf>, %23, %cst_18 [1] : vector<32x128xf32> to vector<32xf32>
    %26 = vector.shape_cast %25 : vector<32xf32> to vector<32x1xf32>
    %27 = vector.broadcast %26 : vector<32x1xf32> to vector<32x128xf32>
    %28 = arith.cmpf oeq, %23, %27 : vector<32x128xf32>
    %c128_i32 = arith.constant 128 : i32
    %29 = vector.broadcast %c128_i32 : i32 to vector<32x128xi32>
    %30 = arith.select %28, %24, %29 : vector<32x128xi1>, vector<32x128xi32>
    %cst_19 = arith.constant dense<2147483647> : vector<32xi32>
    %31 = vector.multi_reduction <minsi>, %30, %cst_19 [1] : vector<32x128xi32> to vector<32xi32>
    %32 = vector.shape_cast %31 : vector<32xi32> to vector<32x1xi32>
    %33 = vector.broadcast %32 : vector<32x1xi32> to vector<32x128xi32>
    %34 = arith.cmpi eq, %24, %33 : vector<32x128xi32>
    %35 = arith.extui %34 : vector<32x128xi1> to vector<32x128xi32>
    %36 = arith.sitofp %35 : vector<32x128xi32> to vector<32x128xf32>
    %cst_20 = arith.constant dense<0.000000e+00> : vector<32x128xf32>
    %37 = tpu.matmul %36, %16, %cst_20 {dimension_numbers = #tpu.dot_dimension_numbers<[1], [0], [0], [1], [0, 0, 1, 1], [], []>} : vector<32x128xf32>, vector<128x128xf32>, vector<32x128xf32> -> vector<32x128xf32>
    %c32_i32 = arith.constant 32 : i32
    %38 = arith.muli %arg0, %c32_i32 : i32
    %39 = tpu.iota {dimensions = array<i32: 0>} : vector<32x1xi32>
    %40 = vector.broadcast %38 : i32 to vector<32x1xi32>
    %41 = arith.addi %40, %39 : vector<32x1xi32>
    %c48_i32 = arith.constant 48 : i32
    %42 = vector.broadcast %c48_i32 : i32 to vector<32x1xi32>
    %43 = arith.cmpi slt, %41, %42 : vector<32x1xi32>
    %44 = arith.extui %43 : vector<32x1xi1> to vector<32x1xi32>
    %45 = arith.sitofp %44 : vector<32x1xi32> to vector<32x1xf32>
    %46 = arith.subf %37, %15 : vector<32x128xf32>
    %47 = arith.mulf %46, %46 : vector<32x128xf32>
    %cst_21 = arith.constant dense<0.000000e+00> : vector<32xf32>
    %48 = vector.multi_reduction <add>, %47, %cst_21 [1] : vector<32x128xf32> to vector<32xf32>
    %49 = vector.shape_cast %48 : vector<32xf32> to vector<32x1xf32>
    %c0_22 = arith.constant 0 : index
    %c0_23 = arith.constant 0 : index
    %50 = vector.load %arg15[%c0_22, %c0_23] : memref<1x1xf32, #tpu.memory_space<vmem>>, vector<1x1xf32>
    %51 = arith.mulf %49, %45 : vector<32x1xf32>
    %cst_24 = arith.constant dense<0.000000e+00> : vector<1xf32>
    %52 = vector.multi_reduction <add>, %51, %cst_24 [0] : vector<32x1xf32> to vector<1xf32>
    %53 = vector.shape_cast %52 : vector<1xf32> to vector<1x1xf32>
    %54 = arith.addf %50, %53 : vector<1x1xf32>
    %c0_25 = arith.constant 0 : index
    %c0_26 = arith.constant 0 : index
    %55 = vector.load %arg15[%c0_25, %c0_26] : memref<1x1xf32, #tpu.memory_space<vmem>>, vector<1x1xf32>
    tpu.vector_store %arg15[%c0_25, %c0_26], %54 {strides = array<i32>} : memref<1x1xf32, #tpu.memory_space<vmem>>, vector<1x1xf32>,
    %c0_27 = arith.constant 0 : index
    %c0_28 = arith.constant 0 : index
    %56 = vector.load %arg16[%c0_27, %c0_28] : memref<1x128xf32, #tpu.memory_space<vmem>>, vector<1x128xf32>
    %57 = vector.broadcast %45 : vector<32x1xf32> to vector<32x128xf32>
    %58 = arith.mulf %36, %57 : vector<32x128xf32>
    %cst_29 = arith.constant dense<0.000000e+00> : vector<128xf32>
    %59 = vector.multi_reduction <add>, %58, %cst_29 [0] : vector<32x128xf32> to vector<128xf32>
    %60 = vector.shape_cast %59 : vector<128xf32> to vector<1x128xf32>
    %61 = arith.addf %56, %60 : vector<1x128xf32>
    %c0_30 = arith.constant 0 : index
    %c0_31 = arith.constant 0 : index
    %62 = vector.load %arg16[%c0_30, %c0_31] : memref<1x128xf32, #tpu.memory_space<vmem>>, vector<1x128xf32>
    tpu.vector_store %arg16[%c0_30, %c0_31], %61 {strides = array<i32>} : memref<1x128xf32, #tpu.memory_space<vmem>>, vector<1x128xf32>,
    %c0_32 = arith.constant 0 : index
    %c0_33 = arith.constant 0 : index
    %63 = vector.load %arg8[%c0_32, %c0_33] : memref<128x128xf32, #tpu.memory_space<vmem>>, vector<128x128xf32>
    %cst_34 = arith.constant dense<0.000000e+00> : vector<32x128xf32>
    %64 = tpu.matmul %37, %63, %cst_34 {dimension_numbers = #tpu.dot_dimension_numbers<[1], [0], [0], [1], [0, 0, 1, 1], [], []>} : vector<32x128xf32>, vector<128x128xf32>, vector<32x128xf32> -> vector<32x128xf32>
    %c0_35 = arith.constant 0 : index
    %c0_36 = arith.constant 0 : index
    %65 = vector.load %arg9[%c0_35, %c0_36] : memref<1x128xf32, #tpu.memory_space<vmem>>, vector<1x128xf32>
    %66 = vector.broadcast %65 : vector<1x128xf32> to vector<32x128xf32>
    %67 = arith.addf %64, %66 : vector<32x128xf32>
    %cst_37 = arith.constant 0.000000e+00 : f32
    %68 = vector.broadcast %cst_37 : f32 to vector<32x128xf32>
    %69 = arith.maximumf %67, %68 : vector<32x128xf32>
    %c0_38 = arith.constant 0 : index
    %c0_39 = arith.constant 0 : index
    %70 = vector.load %arg10[%c0_38, %c0_39] : memref<128x128xf32, #tpu.memory_space<vmem>>, vector<128x128xf32>
    %cst_40 = arith.constant dense<0.000000e+00> : vector<32x128xf32>
    %71 = tpu.matmul %69, %70, %cst_40 {dimension_numbers = #tpu.dot_dimension_numbers<[1], [0], [0], [1], [0, 0, 1, 1], [], []>} : vector<32x128xf32>, vector<128x128xf32>, vector<32x128xf32> -> vector<32x128xf32>
    %c0_41 = arith.constant 0 : index
    %c0_42 = arith.constant 0 : index
    %72 = vector.load %arg11[%c0_41, %c0_42] : memref<1x128xf32, #tpu.memory_space<vmem>>, vector<1x128xf32>
    %73 = vector.broadcast %72 : vector<1x128xf32> to vector<32x128xf32>
    %74 = arith.addf %71, %73 : vector<32x128xf32>
    %c0_43 = arith.constant 0 : index
    %c0_44 = arith.constant 0 : index
    %75 = vector.load %arg13[%c0_43, %c0_44] : memref<32x128xf32, #tpu.memory_space<vmem>>, vector<32x128xf32>
    tpu.vector_store %arg13[%c0_43, %c0_44], %74 {strides = array<i32>} : memref<32x128xf32, #tpu.memory_space<vmem>>, vector<32x128xf32>,
    %c1_i32 = arith.constant 1 : i32
    %76 = arith.cmpi eq, %arg0, %c1_i32 : i32
    %77 = arith.extui %76 : i1 to i32
    %c0_i32_45 = arith.constant 0 : i32
    %78 = arith.cmpi ne, %77, %c0_i32_45 : i32
    scf.if %78 {
      %c0_46 = arith.constant 0 : index
      %c0_47 = arith.constant 0 : index
      %79 = vector.load %arg15[%c0_46, %c0_47] : memref<1x1xf32, #tpu.memory_space<vmem>>, vector<1x1xf32>
      %cst_48 = arith.constant 3.840000e+02 : f32
      %80 = vector.broadcast %cst_48 : f32 to vector<1x1xf32>
      %81 = arith.divf %79, %80 : vector<1x1xf32>
      %cst_49 = arith.constant 1.250000e+00 : f32
      %82 = vector.broadcast %cst_49 : f32 to vector<1x1xf32>
      %83 = arith.mulf %82, %81 : vector<1x1xf32>
      %c0_50 = arith.constant 0 : index
      %c0_51 = arith.constant 0 : index
      %84 = vector.load %arg12[%c0_50, %c0_51] : memref<1x1xf32, #tpu.memory_space<vmem>>, vector<1x1xf32>
      tpu.vector_store %arg12[%c0_50, %c0_51], %83 {strides = array<i32>} : memref<1x1xf32, #tpu.memory_space<vmem>>, vector<1x1xf32>,
      %c0_52 = arith.constant 0 : index
      %c0_53 = arith.constant 0 : index
      %85 = vector.load %arg16[%c0_52, %c0_53] : memref<1x128xf32, #tpu.memory_space<vmem>>, vector<1x128xf32>
      %cst_54 = arith.constant 4.800000e+01 : f32
      %86 = vector.broadcast %cst_54 : f32 to vector<1x128xf32>
      %87 = arith.divf %85, %86 : vector<1x128xf32>
      %cst_55 = arith.constant 1.000000e-10 : f32
      %88 = vector.broadcast %cst_55 : f32 to vector<1x128xf32>
      %89 = arith.addf %87, %88 : vector<1x128xf32>
      %90 = math.log %89 : vector<1x128xf32>
      %91 = arith.mulf %87, %90 : vector<1x128xf32>
      %cst_56 = arith.constant dense<0.000000e+00> : vector<1xf32>
      %92 = vector.multi_reduction <add>, %91, %cst_56 [1] : vector<1x128xf32> to vector<1xf32>
      %93 = vector.shape_cast %92 : vector<1xf32> to vector<1x1xf32>
      %cst_57 = arith.constant 0.000000e+00 : f32
      %94 = vector.broadcast %cst_57 : f32 to vector<1x1xf32>
      %95 = arith.subf %94, %93 : vector<1x1xf32>
      %96 = math.exp %95 : vector<1x1xf32>
      %c0_58 = arith.constant 0 : index
      %c0_59 = arith.constant 0 : index
      %97 = vector.load %arg14[%c0_58, %c0_59] : memref<1x1xf32, #tpu.memory_space<vmem>>, vector<1x1xf32>
      tpu.vector_store %arg14[%c0_58, %c0_59], %96 {strides = array<i32>} : memref<1x1xf32, #tpu.memory_space<vmem>>, vector<1x1xf32>,
    } else {
    }
    return
  }
  func.func @transform_0(%arg0: i32) -> (i32, i32) {
    %c0_i32 = arith.constant 0 : i32
    %c0_i32_0 = arith.constant 0 : i32
    return %arg0, %c0_i32 : i32, i32
  }
  func.func @transform_1(%arg0: i32) -> (i32, i32) {
    %c0_i32 = arith.constant 0 : i32
    %c0_i32_0 = arith.constant 0 : i32
    %c0_i32_1 = arith.constant 0 : i32
    return %c0_i32, %c0_i32_0 : i32, i32
  }
  func.func @transform_2(%arg0: i32) -> (i32, i32) {
    %c0_i32 = arith.constant 0 : i32
    %c0_i32_0 = arith.constant 0 : i32
    %c0_i32_1 = arith.constant 0 : i32
    return %c0_i32, %c0_i32_0 : i32, i32
  }
  func.func @transform_3(%arg0: i32) -> (i32, i32) {
    %c0_i32 = arith.constant 0 : i32
    %c0_i32_0 = arith.constant 0 : i32
    %c0_i32_1 = arith.constant 0 : i32
    return %c0_i32, %c0_i32_0 : i32, i32
  }
  func.func @transform_4(%arg0: i32) -> (i32, i32) {
    %c0_i32 = arith.constant 0 : i32
    %c0_i32_0 = arith.constant 0 : i32
    %c0_i32_1 = arith.constant 0 : i32
    return %c0_i32, %c0_i32_0 : i32, i32
  }
  func.func @transform_5(%arg0: i32) -> (i32, i32) {
    %c0_i32 = arith.constant 0 : i32
    %c0_i32_0 = arith.constant 0 : i32
    %c0_i32_1 = arith.constant 0 : i32
    return %c0_i32, %c0_i32_0 : i32, i32
  }
  func.func @transform_6(%arg0: i32) -> (i32, i32) {
    %c0_i32 = arith.constant 0 : i32
    %c0_i32_0 = arith.constant 0 : i32
    %c0_i32_1 = arith.constant 0 : i32
    return %c0_i32, %c0_i32_0 : i32, i32
  }
  func.func @transform_7(%arg0: i32) -> (i32, i32) {
    %c0_i32 = arith.constant 0 : i32
    %c0_i32_0 = arith.constant 0 : i32
    %c0_i32_1 = arith.constant 0 : i32
    return %c0_i32, %c0_i32_0 : i32, i32
  }
  func.func @transform_8(%arg0: i32) -> (i32, i32) {
    %c0_i32 = arith.constant 0 : i32
    %c0_i32_0 = arith.constant 0 : i32
    %c0_i32_1 = arith.constant 0 : i32
    return %c0_i32, %c0_i32_0 : i32, i32
  }
  func.func @transform_9(%arg0: i32) -> (i32, i32) {
    %c0_i32 = arith.constant 0 : i32
    %c0_i32_0 = arith.constant 0 : i32
    %c0_i32_1 = arith.constant 0 : i32
    return %c0_i32, %c0_i32_0 : i32, i32
  }
  func.func @transform_10(%arg0: i32) -> (i32, i32) {
    %c0_i32 = arith.constant 0 : i32
    %c0_i32_0 = arith.constant 0 : i32
    %c0_i32_1 = arith.constant 0 : i32
    return %c0_i32, %c0_i32_0 : i32, i32
  }
  func.func @transform_11(%arg0: i32) -> (i32, i32) {
    %c0_i32 = arith.constant 0 : i32
    %c0_i32_0 = arith.constant 0 : i32
    %c0_i32_1 = arith.constant 0 : i32
    return %c0_i32, %c0_i32_0 : i32, i32
  }
  func.func @transform_12(%arg0: i32) -> (i32, i32) {
    %c0_i32 = arith.constant 0 : i32
    %c0_i32_0 = arith.constant 0 : i32
    return %arg0, %c0_i32 : i32, i32
  }
  func.func @transform_13(%arg0: i32) -> (i32, i32) {
    %c0_i32 = arith.constant 0 : i32
    %c0_i32_0 = arith.constant 0 : i32
    %c0_i32_1 = arith.constant 0 : i32
    return %c0_i32, %c0_i32_0 : i32, i32
  }
}

</mosaic_0001>

<bundles_post_ra>
// kernel: tpu_custom_call.1
= control target key start
LH: loop header
LB: loop body
LE: loop exit
PB: predicated region body
PF: predicated region fallthrough
CT: control target
= control target key end

     0   :  { %s3126_s0 = inlined_call_operand.hbm [shape: f32[64,128], index: 0, kind: input, shape index: {}]   ;;  %s3127_s1 = inlined_call_operand.hbm [shape: f32[128,128], index: 1, kind: input, shape index: {}]   ;;  %s3128_s2 = inlined_call_operand.vmem [shape: f32[1,128], index: 2, kind: input, shape index: {}]   ;;  %s3129_s3 = inlined_call_operand.hbm [shape: f32[128,128], index: 3, kind: input, shape index: {}]   ;;  %s3130_s4 = inlined_call_operand.vmem [shape: f32[1,128], index: 4, kind: input, shape index: {}]   ;;  %s3131_s5 = inlined_call_operand.hbm [shape: f32[128,128], index: 5, kind: input, shape index: {}]   ;;  %s3132_s6 = inlined_call_operand.vmem [shape: f32[1,128], index: 6, kind: input, shape index: {}]   ;;  %s3133_s7 = inlined_call_operand.hbm [shape: f32[128,128], index: 7, kind: input, shape index: {}]   ;;  %s3134_s8 = inlined_call_operand.vmem [shape: f32[1,128], index: 8, kind: input, shape index: {}]   ;;  %s3135_s9 = inlined_call_operand.hbm [shape: f32[128,128], index: 9, kind: input, shape index: {}]   ;;  %s3136_s10 = inlined_call_operand.vmem [shape: f32[1,128], index: 10, kind: input, shape index: {}]   ;;  %s3137_s11 = inlined_call_operand.hbm [shape: f32[1,1], index: 11, kind: output, shape index: {0}]   ;;  %s3138_s12 = inlined_call_operand.hbm [shape: f32[64,128], index: 12, kind: output, shape index: {1}]   ;;  %s3139_s13 = inlined_call_operand.hbm [shape: f32[1,1], index: 13, kind: output, shape index: {2}]  }
   0x1   :  { %3148 = sst [smem:[#allocation26_spill]] %s3127_s1 }
   0x2   :  { %3149 = sst [smem:[#allocation27_spill]] %s3134_s8 }
   0x3   :  { %3150 = sst [smem:[#allocation28_spill]] %s3136_s10 }
   0x4   :  { %3151 = sst [smem:[#allocation29_spill]] %s3137_s11 }
   0x5   :  { %3152 = sst [smem:[#allocation30_spill]] %s3138_s12 }
   0x6   :  { %3153 = sst [smem:[#allocation31_spill]] %s3139_s13 }
   0x7   :  { %19 = vsyncpa [#allocation5], 0 }
   0x8   :  { %21 = vsyncpa [#allocation5 + $0x1], 0 }
   0x9   :  { %22 = vsyncpa [#allocation8], 0 }
   0xa   :  { %23 = vsyncpa [#allocation11], 0 }
   0xb   :  { %24 = vsyncpa [#allocation14], 0 }
   0xc   :  { %25 = vsyncpa [#allocation6], 0 }
   0xd   :  { %26 = vsyncpa [#allocation17], 0 }
   0xe   :  { %28 = vsyncpa [#allocation17 + $0x1], 0  ;;  %s2672_s25 = smov 0   ;;  %s2674_s26 = smov 0  }
   0xf   :  { %s2676_s27 = smov 0   ;;  %s2678_s28 = smov 0  }
  0x10 LB: > { %s2586_s29 = smov [#allocation7]   ;;  %s2693_s14 = sadd.s32 4294967295, %s2584_s28   ;;  %s2584_s28 = sphi %s2678_s28, %s3193_s28   ;;  %s2580_s27 = sphi %s2676_s27, %s3192_s27   ;;  %s2576_s26 = sphi %s2674_s26, %s3191_s26   ;;  %s2572_s25 = sphi %s2672_s25, %s3190_s25  }
  0x11   : > { %s355_s30 = sshll.u32 %s2586_s29, 4  ;;  %p1549_p0 = scmp.ge.s32.totalorder %s2584_s28, 1  ;;  %s2699_s30 = int_to_ptr.vmem [resolvable:$true] %s355_s30 }
  0x12   : > { %p3143_p1 = scmp.eq.s32.totalorder %s2693_s14, 0  ;;  %p343_p2 = scmp.lt.s32.totalorder %s2584_s28, 3 }
  0x13   : > { %s2587_s16 = smov [#allocation10]   ;;  %s2588_s19 = smov [#allocation9]  }
  0x14   : > { %p2701_p4 = pnand %p1549_p0, %p343_p2  ;;  %s387_s17 = sshll.u32 %s2587_s16, 4  ;;  %s2714_s17 = int_to_ptr.vmem [resolvable:$true] %s387_s17 }
  0x15   : > { %s371_s20 = sshll.u32 %s2588_s19, 4  ;;  %s3156_s1 = sld [smem:[#allocation26_spill]]  ;;  %s2716_s20 = int_to_ptr.vmem [resolvable:$true] %s371_s20 }
  0x16   : > { %s3154_s15 = scalar_select %p2701_p4, 1, 0 }
  0x17   : > { %p2186_p6 = pneg %p2701_p4 }
  0x19   : > { %p2710_p7 = pnand %p2186_p6, %p3143_p1 }
  0x1b   : > { %s2276_s23 = scalar_lea.hbm %s3156_s1, 2048  ;;  %p2726_p9 = pneg %p2710_p7 }
  0x1c   : > { %p2277_p8 = scmp.ne.s32.totalorder %s3156_s1, %s2276_s23  ;;  %p2283_p12 = scmp.lt.u32.totalorder %s2276_s23, %s3156_s1 }
  0x1e   : > { %p2279_p10 = pnand %p2726_p9, %p2277_p8 }
  0x20   : > { %p2280_p11 = pneg %p2279_p10 }
  0x22   : > { %p2285_p13 = pnand %p2283_p12, %p2280_p11 }
  0x24   : > { %2288 = shalt.err (!%p2285_p13)
}
  0x25   : > { %s2289_s21 = scalar_lea.vmem %s2699_s30, 2048  ;;  %p2297_p5 = scmp.lt.s32.totalorder %s2699_s30, %s2699_s30 }
  0x26   : > { %p2290_p0 = scmp.ne.s32.totalorder %s2699_s30, %s2289_s21  ;;  %p2298_p3 = scmp.lt.s32.totalorder %s2289_s21, %s2289_s21 }
  0x28   : > { %p2292_p2 = pnand %p2290_p0, %p2726_p9  ;;  %p2299_p8 = por %p2298_p3, %p2297_p5 }
  0x2a   : > { %p2293_p6 = pneg %p2292_p2 }
  0x2c   : > { %p2300_p10 = pnand %p2299_p8, %p2293_p6 }
  0x2e   : > { %2303 = shalt.err (!%p2300_p10)
}
  0x2f   : > { %s2589_s22 = smov 128   ;;  %s2590_s13 = smov 8  }
  0x30   : > { %2189 = dma.hbm_to_vmem [thread:$0]  (!%p2710_p7), %s3156_s1, 2048, %s2699_s30, [#allocation8], %s2589_s22, %s2589_s22, %s2590_s13  }
  0x31   : > { %s2304_s21 = scalar_lea.hbm %s3131_s5, 2048 }
  0x32   : > { %p2305_p3 = scmp.ne.s32.totalorder %s3131_s5, %s2304_s21  ;;  %p2311_p12 = scmp.lt.u32.totalorder %s2304_s21, %s3131_s5 }
  0x34   : > { %p2307_p5 = pnand %p2305_p3, %p2726_p9 }
  0x36   : > { %p2308_p11 = pneg %p2307_p5 }
  0x38   : > { %p2313_p13 = pnand %p2311_p12, %p2308_p11 }
  0x3a   : > { %2316 = shalt.err (!%p2313_p13)
}
  0x3b   : > { %s2317_s30 = scalar_lea.vmem %s2714_s17, 2048  ;;  %p2325_p8 = scmp.lt.s32.totalorder %s2714_s17, %s2714_s17 }
  0x3c   : > { %p2318_p0 = scmp.ne.s32.totalorder %s2714_s17, %s2317_s30  ;;  %p2326_p10 = scmp.lt.s32.totalorder %s2317_s30, %s2317_s30 }
  0x3e   : > { %p2320_p2 = pnand %p2318_p0, %p2726_p9  ;;  %p2327_p3 = por %p2326_p10, %p2325_p8 }
  0x40   : > { %p2321_p6 = pneg %p2320_p2 }
  0x42   : > { %p2328_p5 = pnand %p2327_p3, %p2321_p6 }
  0x44   : > { %2331 = shalt.err (!%p2328_p5)
}
  0x45   : > { %2195 = dma.hbm_to_vmem [thread:$0]  (!%p2710_p7), %s3131_s5, 2048, %s2714_s17, [#allocation11], %s2589_s22, %s2589_s22, %s2590_s13  }
  0x46   : > { %s2332_s23 = scalar_lea.hbm %s3129_s3, 2048 }
  0x47   : > { %p2333_p11 = scmp.ne.s32.totalorder %s3129_s3, %s2332_s23  ;;  %p2339_p0 = scmp.lt.u32.totalorder %s2332_s23, %s3129_s3 }
  0x49   : > { %p2335_p12 = pnand %p2333_p11, %p2726_p9 }
  0x4b   : > { %p2336_p13 = pneg %p2335_p12 }
  0x4d   : > { %p2341_p2 = pnand %p2339_p0, %p2336_p13 }
  0x4f   : > { %2344 = shalt.err (!%p2341_p2)
}
  0x50   : > { %s2345_s17 = scalar_lea.vmem %s2716_s20, 2048  ;;  %p2353_p3 = scmp.lt.s32.totalorder %s2716_s20, %s2716_s20 }
  0x51   : > { %p2346_p6 = scmp.ne.s32.totalorder %s2716_s20, %s2345_s17  ;;  %p2354_p5 = scmp.lt.s32.totalorder %s2345_s17, %s2345_s17 }
  0x53   : > { %p2348_p8 = pnand %p2346_p6, %p2726_p9  ;;  %p2355_p11 = por %p2354_p5, %p2353_p3 }
  0x55   : > { %p2349_p10 = pneg %p2348_p8 }
  0x57   : > { %p2356_p12 = pnand %p2355_p11, %p2349_p10 }
  0x59   : > { %2359 = shalt.err (!%p2356_p12)
}
  0x5a   : > { %2192 = dma.hbm_to_vmem [thread:$0]  (!%p2710_p7), %s3129_s3, 2048, %s2716_s20, [#allocation8], %s2589_s22, %s2589_s22, %s2590_s13  }
  0x5b   : > { %s2591_s10 = smov [#allocation12]   ;;  %s2592_s12 = smov [#allocation13]  }
  0x5c   : > { %s403_s11 = sshll.u32 %s2591_s10, 4  ;;  %s419_s23 = sshll.u32 %s2592_s12, 4  ;;  %s404_s11 = int_to_ptr.vmem [resolvable:$true] %s403_s11  ;;  %s420_s23 = int_to_ptr.vmem [resolvable:$true] %s419_s23 }
  0x5d   : > { %s2360_s19 = scalar_lea.hbm %s3133_s7, 2048 }
  0x5e   : > { %p2361_p13 = scmp.ne.s32.totalorder %s3133_s7, %s2360_s19  ;;  %p2367_p6 = scmp.lt.u32.totalorder %s2360_s19, %s3133_s7 }
  0x60   : > { %p2363_p0 = pnand %p2361_p13, %p2726_p9 }
  0x62   : > { %p2364_p2 = pneg %p2363_p0 }
  0x64   : > { %p2369_p8 = pnand %p2367_p6, %p2364_p2 }
  0x66   : > { %2372 = shalt.err (!%p2369_p8)
}
  0x67   : > { %s2373_s20 = scalar_lea.vmem %s404_s11, 2048  ;;  %p2381_p11 = scmp.lt.s32.totalorder %s404_s11, %s404_s11 }
  0x68   : > { %p2374_p10 = scmp.ne.s32.totalorder %s404_s11, %s2373_s20  ;;  %p2382_p12 = scmp.lt.s32.totalorder %s2373_s20, %s2373_s20 }
  0x6a   : > { %p2376_p3 = pnand %p2374_p10, %p2726_p9  ;;  %p2383_p1 = por %p2382_p12, %p2381_p11 }
  0x6c   : > { %p2377_p5 = pneg %p2376_p3 }
  0x6e   : > { %p2384_p4 = pnand %p2383_p1, %p2377_p5 }
  0x70   : > { %2387 = shalt.err (!%p2384_p4)
}
  0x71   : > { %2198 = dma.hbm_to_vmem [thread:$0]  (!%p2710_p7), %s3133_s7, 2048, %s404_s11, [#allocation11], %s2589_s22, %s2589_s22, %s2590_s13  }
  0x72   : > { %s2388_s24 = scalar_lea.hbm %s3135_s9, 2048 }
  0x73   : > { %p2389_p1 = scmp.ne.s32.totalorder %s3135_s9, %s2388_s24  ;;  %p2395_p0 = scmp.lt.u32.totalorder %s2388_s24, %s3135_s9 }
  0x75   : > { %p2391_p4 = pnand %p2389_p1, %p2726_p9 }
  0x77   : > { %p2392_p13 = pneg %p2391_p4 }
  0x79   : > { %p2397_p2 = pnand %p2395_p0, %p2392_p13 }
  0x7b   : > { %2400 = shalt.err (!%p2397_p2)
}
  0x7c   : > { %s2401_s30 = scalar_lea.vmem %s420_s23, 2048  ;;  %p2409_p3 = scmp.lt.s32.totalorder %s420_s23, %s420_s23 }
  0x7d   : > { %p2402_p6 = scmp.ne.s32.totalorder %s420_s23, %s2401_s30  ;;  %p2410_p5 = scmp.lt.s32.totalorder %s2401_s30, %s2401_s30 }
  0x7f   : > { %p2404_p8 = pnand %p2402_p6, %p2726_p9  ;;  %p2411_p11 = por %p2410_p5, %p2409_p3 }
  0x81   : > { %p2405_p10 = pneg %p2404_p8 }
  0x83   : > { %p2412_p12 = pnand %p2411_p11, %p2405_p10 }
  0x85   : > { %2415 = shalt.err (!%p2412_p12)
}
  0x86   : > { %2201 = dma.hbm_to_vmem [thread:$0]  (!%p2710_p7), %s3135_s9, 2048, %s420_s23, [#allocation14], %s2589_s22, %s2589_s22, %s2590_s13  }
  0x87   : > { %s3145_s18 = sadd.s32 4294967294, %s2584_s28   ;;  %s2846_s16 = sadd.s32 1, %s2584_s28  }
  0x88   : > { %s41_s1 = sadd.s32 1, %s2580_s27  ;;  %s38_s8 = ssub.s32 %s2584_s28, %s2846_s16 }
  0x89   : > { %p48_p9 = scmp.ne.s32.totalorder %s2580_s27, %s2576_s26  ;;  %p39_p1 = scmp.eq.s32.totalorder %s38_s8, 0 }
  0x8a   : > { %p49_p4 = scmp.eq.s32.totalorder %s2584_s28, 0  ;;  %p54_p13 = scmp.ne.s32.totalorder %s2576_s26, %s2572_s25 }
  0x8b   : > { %p3146_p0 = scmp.eq.s32.totalorder %s2693_s14, 1  ;;  %p3158_p6 = scmp.eq.s32.totalorder %s2693_s14, 0 }
  0x8c   : > { %s2858_s10 = scalar_select %p39_p1, %s2580_s27, %s41_s1  }
  0x8d   : > { %p50_p2 = por %p49_p4, %p48_p9  ;;  %p2862_p8 = por %p3158_p6, %p54_p13 }
  0x8e   : > { %p2868_p7 = por %p3146_p0, %p48_p9  ;;  %p315_p10 = scmp.eq.s32.totalorder %s3145_s18, 1 }
  0x8f   : > { %p2215_p3 = scmp.lt.s32.totalorder %s2584_s28, 2  ;;  %s436_s24 = sand.u32 1, %s2580_s27  }
  0x90   : > { %s3160_s23 = scalar_select %p2868_p7, 1, 0 }
  0x91   : > { %p2876_p5 = por %p315_p10, %p54_p13  ;;  %s1556_s29 = sshll.u32 %s436_s24, 5 }
  0x92   : > { %s1596_s19 = sshll.u32 %s2584_s28, 9  ;;  %s440_s11 = scalar_lea.vmem [#allocation4], %s1556_s29 }
  0x93   : > { %s3161_s25 = scalar_select %p2876_p5, 1, 0 }
  0x94   : > { %s2884_s30 = scalar_lea.hbm %s3126_s0, %s1596_s19  ;;  %s447_s20 = sshll.u32 %s440_s11, 4  ;;  %s2890_s20 = int_to_ptr.vmem [resolvable:$true] %s447_s20 }
  0x95   : > { %p2886_p11 = pnand %p2215_p3, %p50_p2  ;;  %s2892_s8 = scalar_lea.sflag [#allocation5], %s436_s24 }
  0x96   : > { %s2416_s18 = scalar_lea.hbm %s2884_s30, 512  ;;  %s2421_s21 = scalar_lea.hbm %s3126_s0, 1024 }
  0x97   : > { %p2417_p12 = scmp.ne.s32.totalorder %s2884_s30, %s2416_s18  ;;  %p2418_p9 = pneg %p2886_p11 }
  0x98   : > { %p2422_p13 = scmp.lt.u32.totalorder %s2884_s30, %s3126_s0  ;;  %p2423_p2 = scmp.lt.u32.totalorder %s2421_s21, %s2416_s18 }
  0x99   : > { %p2419_p1 = pnand %p2418_p9, %p2417_p12  ;;  %p2425_p10 = scmp.lt.u32.totalorder %s2416_s18, %s2884_s30 }
  0x9a   : > { %p2424_p6 = por %p2423_p2, %p2422_p13 }
  0x9b   : > { %p2420_p4 = pneg %p2419_p1 }
  0x9c   : > { %p2426_p3 = por %p2425_p10, %p2424_p6 }
  0x9e   : > { %p2427_p0 = pnand %p2426_p3, %p2420_p4 }
  0xa0   : > { %2430 = shalt.err (!%p2427_p0)
}
  0xa1   : > { %s2431_s24 = scalar_lea.vmem %s2890_s20, 512  ;;  %s2593_s29 = smov [#allocation4]  }
  0xa2   : > { %p2432_p12 = scmp.ne.s32.totalorder %s2890_s20, %s2431_s24  ;;  %s2436_s19 = sshll.u32 %s2593_s29, 4  ;;  %s2437_s19 = int_to_ptr.vmem [resolvable:$false] %s2436_s19 }
  0xa3   : > { %s2438_s17 = scalar_lea.vmem %s2437_s19, 1024  ;;  %p2439_p7 = scmp.lt.s32.totalorder %s2890_s20, %s2437_s19 }
  0xa4   : > { %p2434_p1 = pnand %p2432_p12, %p2418_p9  ;;  %p2440_p13 = scmp.lt.s32.totalorder %s2438_s17, %s2431_s24 }
  0xa6   : > { %p2435_p5 = pneg %p2434_p1  ;;  %p2441_p2 = por %p2440_p13, %p2439_p7 }
  0xa8   : > { %p2442_p6 = pnand %p2441_p2, %p2435_p5 }
  0xaa   : > { %2445 = shalt.err (!%p2442_p6)
}
  0xab   : > { %2205 = dma.hbm_to_vmem [thread:$0]  (!%p2886_p11), %s2884_s30, 512, %s2890_s20, %s2892_s8, %s2589_s22, %s2589_s22, %s2590_s13  }
  0xac   : > { %p3163_p0 = scmp.ne.s32.totalorder %s3154_s15, 0 }
  0xad   : > { %s461_s18 = sand.u32 (!%p3163_p0), 1, %s2576_s26  }
  0xae   : > { %459 = sbr.rel (%p3163_p0) target bundleno = 2076 (0x81c), region = 64  ;;  %s1560_s21 = sshll.u32 (!%p3163_p0), %s461_s18, 5 }
  0xaf   : > { %s462_s11 = scalar_lea.sflag (!%p3163_p0), [#allocation5], %s461_s18  ;;  %s2926_s24 = scalar_lea.vmem (!%p3163_p0), [#allocation4], %s1560_s21 }
  0xb5   : > { %2543 = dma.done.wait (%p2862_p8), %s462_s11, 512  }
  0xb6   : > { %2545 = vsyncadd (%p2862_p8), %s462_s11, 4294966784  ;;  %p3164_p7 = scmp.eq.s32.totalorder %s2693_s14, 0 }
  0xb8   : > { %2547 = dma.done.wait (%p3164_p7), [#allocation8], 4096   ;;  %p3165_p5 = pmov %p3164_p7 }
  0xba   : > { %2549 = vsyncadd (%p3165_p5), [#allocation8], 4294963200  ;;  %p3166_p11 = pmov %p3165_p5 }
  0xbb   : > { %p3167_p9 = pmov %p3165_p5 }
  0xbc   : > { %2551 = dma.done.wait (%p3166_p11), [#allocation11], 4096  }
  0xbd   : > { %2553 = vsyncadd (%p3167_p9), [#allocation11], 4294963200  ;;  %p3168_p4 = pmov %p3165_p5 }
  0xbf   : > { %2555 = dma.done.wait (%p3168_p4), [#allocation14], 2048   ;;  %p3169_p10 = pmov %p3168_p4 }
  0xc0   : > { %s2944_s15 = scalar_lea.vmem [#allocation16], %s1560_s21  ;;  %p3170_p8 = scmp.ne.s32.totalorder %s2693_s14, 0 }
  0xc1   : > { %2557 = vsyncadd (%p3169_p10), [#allocation14], 4294965248  ;;  %vm534_vm0 = vcmask (!%p3170_p8), 0   ;;  %v2594_v0 = vmov (!%p3170_p8), 0.0  }
  0xc2   : > { %533 = sbr.rel (%p3170_p8) target bundleno = 201 (0xc9), region = 92  ;;  %535 = vst.msk [vmem:[#allocation2] sm:$0x1] (!%p3170_p8), %vm534_vm0, %v2594_v0  ;;  %536 = vst [vmem:[#allocation3] sm:$0x1] (!%p3170_p8), %v2594_v0 }
  0xc9 PF: > { %v541_v1 = vld [vmem:[#allocation7] sm:$0xff]  ;;  %v542_v2 = vld [vmem:[#allocation7 + $0x8] sm:$0xff]  ;;  %v543_v3 = vld [vmem:[#allocation7 + $0x10] sm:$0xff]  ;;  %s1579_s8 = sshll.u32 %s2693_s14, 5  ;;  %s3171_s17 = sld [smem:[#allocation27_spill]] }
  0xca   : > { %v1946_v4 = vpack.c.bf16 %v542_v2, %v541_v1  ;;  %v544_v5 = vld [vmem:[#allocation7 + $0x18] sm:$0xff]  ;;  %v545_v7 = vld [vmem:[#allocation7 + $0x20] sm:$0xff]  ;;  %v546_v8 = vld [vmem:[#allocation7 + $0x28] sm:$0xff]  ;;  %s3172_s11 = sld [smem:[#allocation28_spill]]  ;;  %p1586_p3 = scmp.ne.s32.totalorder %s2693_s14, 1 }
  0xcb   : > { %v1950_v6 = vpack.c.bf16 %v544_v5, %v543_v3  ;;  %v1954_v9 = vpack.c.bf16 %v546_v8, %v545_v7  ;;  %v537_v10 = vld [vmem:[%s2926_s24] sm:$0xff]  ;;  %v547_v11 = vld [vmem:[#allocation7 + $0x30] sm:$0xff]  ;;  %v548_v12 = vld [vmem:[#allocation7 + $0x38] sm:$0xff] }
  0xcc   : > { %1947 = vmatprep.subr.bf16.mxu0 %v1946_v4  ;;  %1750 = vmatprep.mubr.f32.mxu0 %v537_v10  ;;  %v653_v13 = vld [vmem:[#allocation9] sm:$0xff]  ;;  %v654_v14 = vld [vmem:[#allocation9 + $0x8] sm:$0xff]  ;;  %v655_v15 = vld [vmem:[#allocation9 + $0x10] sm:$0xff]  ;;  %v1958_v19 = vpack.c.bf16 %v548_v12, %v547_v11 }
  0xcd   : > { %1949 = vmatpush3.bf16.msra.mxu0 %v1946_v4  ;;  %v656_v16 = vld [vmem:[#allocation9 + $0x18] sm:$0xff]  ;;  %v1978_v17 = vpack.c.bf16 %v654_v14, %v653_v13  ;;  %v657_v20 = vld [vmem:[#allocation9 + $0x20] sm:$0xff]  ;;  %v658_v21 = vld [vmem:[#allocation9 + $0x28] sm:$0xff] }
  0xce   : > { %1951 = vmatprep.subr.bf16.mxu0 %v1950_v6  ;;  %v1982_v18 = vpack.c.bf16 %v656_v16, %v655_v15  ;;  %v549_v22 = vld [vmem:[#allocation7 + $0x40] sm:$0xff]  ;;  %v550_v23 = vld [vmem:[#allocation7 + $0x48] sm:$0xff]  ;;  %v1986_v24 = vpack.c.bf16 %v658_v21, %v657_v20  ;;  %v659_v26 = vld [vmem:[#allocation9 + $0x30] sm:$0xff] }
  0xcf   : > { %1979 = vmatprep.subr.bf16.mxu1 %v1978_v17  ;;  %v1962_v25 = vpack.c.bf16 %v550_v23, %v549_v22  ;;  %v660_v27 = vld [vmem:[#allocation9 + $0x38] sm:$0xff]  ;;  %v551_v28 = vld [vmem:[#allocation7 + $0x50] sm:$0xff]  ;;  %v661_v32 = vld [vmem:[#allocation9 + $0x40] sm:$0xff] }
  0xd0   : > { %1981 = vmatpush3.bf16.msra.mxu1 %v1978_v17  ;;  %v552_v29 = vld [vmem:[#allocation7 + $0x58] sm:$0xff]  ;;  %v1990_v30 = vpack.c.bf16 %v660_v27, %v659_v26  ;;  %v662_v33 = vld [vmem:[#allocation9 + $0x48] sm:$0xff]  ;;  %v553_v34 = vld [vmem:[#allocation7 + $0x60] sm:$0xff] }
  0xd1   : > { %1953 = vmatpush3.bf16.msra.mxu0 %v1950_v6  ;;  %1983 = vmatprep.subr.bf16.mxu1 %v1982_v18  ;;  %v1966_v31 = vpack.c.bf16 %v552_v29, %v551_v28  ;;  %v554_v35 = vld [vmem:[#allocation7 + $0x68] sm:$0xff]  ;;  %v1994_v36 = vpack.c.bf16 %v662_v33, %v661_v32  ;;  %v663_v38 = vld [vmem:[#allocation9 + $0x50] sm:$0xff]  ;;  %v664_v39 = vld [vmem:[#allocation9 + $0x58] sm:$0xff] }
  0xd2   : > { %1955 = vmatprep.subr.bf16.mxu0 %v1954_v9  ;;  %v1970_v37 = vpack.c.bf16 %v554_v35, %v553_v34  ;;  %v555_v40 = vld [vmem:[#allocation7 + $0x70] sm:$0xff]  ;;  %v556_v41 = vld [vmem:[#allocation7 + $0x78] sm:$0xff]  ;;  %v1998_v42 = vpack.c.bf16 %v664_v39, %v663_v38  ;;  %v665_v44 = vld [vmem:[#allocation9 + $0x60] sm:$0xff] }
  0xd3   : > { %v1974_v43 = vpack.c.bf16 %v556_v41, %v555_v40  ;;  %v666_v45 = vld [vmem:[#allocation9 + $0x68] sm:$0xff]  ;;  %v539_v48 = vld [vmem:[%s2926_s24 + $0x10] sm:$0xff]  ;;  %v540_v49 = vld [vmem:[%s2926_s24 + $0x18] sm:$0xff] }
  0xd4   : > { %1985 = vmatpush3.bf16.msra.mxu1 %v1982_v18  ;;  %v2002_v46 = vpack.c.bf16 %v666_v45, %v665_v44  ;;  %v538_v47 = vld [vmem:[%s2926_s24 + $0x8] sm:$0xff]  ;;  %v667_v50 = vld [vmem:[#allocation9 + $0x70] sm:$0xff]  ;;  %v668_v51 = vld [vmem:[#allocation9 + $0x78] sm:$0xff] }
  0xd5   : > { %1957 = vmatpush3.bf16.msra.mxu0 %v1954_v9  ;;  %1987 = vmatprep.subr.bf16.mxu1 %v1986_v24  ;;  %v2006_v52 = vpack.c.bf16 %v668_v51, %v667_v50  ;;  %v761_v53 = vld [vmem:[#allocation10] sm:$0xff]  ;;  %v762_v54 = vld [vmem:[#allocation10 + $0x8] sm:$0xff]  ;;  %v763_v55 = vld [vmem:[#allocation10 + $0x10] sm:$0xff] }
  0xd6   : > { %1959 = vmatprep.subr.bf16.mxu0 %v1958_v19  ;;  %v2010_v56 = vpack.c.bf16 %v762_v54, %v761_v53  ;;  %v764_v57 = vld [vmem:[#allocation10 + $0x18] sm:$0xff]  ;;  %v765_v59 = vld [vmem:[#allocation10 + $0x20] sm:$0xff]  ;;  %v766_v60 = vld [vmem:[#allocation10 + $0x28] sm:$0xff] }
  0xd7   : > { %v2014_v58 = vpack.c.bf16 %v764_v57, %v763_v55  ;;  %v2018_v61 = vpack.c.bf16 %v766_v60, %v765_v59  ;;  %v767_v62 = vld [vmem:[#allocation10 + $0x30] sm:$0xff]  ;;  %v768_v63 = vld [vmem:[#allocation10 + $0x38] sm:$0xff]  ;;  %v769_v1 = vld [vmem:[#allocation10 + $0x40] sm:$0xff] }
  0xd8   : > { %1989 = vmatpush3.bf16.msra.mxu1 %v1986_v24  ;;  %v2022_v0 = vpack.c.bf16 %v768_v63, %v767_v62  ;;  %v770_v2 = vld [vmem:[#allocation10 + $0x48] sm:$0xff]  ;;  %v771_v4 = vld [vmem:[#allocation10 + $0x50] sm:$0xff]  ;;  %v772_v5 = vld [vmem:[#allocation10 + $0x58] sm:$0xff] }
  0xd9   : > { %1961 = vmatpush3.bf16.msra.mxu0 %v1958_v19  ;;  %1991 = vmatprep.subr.bf16.mxu1 %v1990_v30  ;;  %v2026_v3 = vpack.c.bf16 %v770_v2, %v769_v1  ;;  %v2030_v6 = vpack.c.bf16 %v772_v5, %v771_v4  ;;  %v773_v7 = vld [vmem:[#allocation10 + $0x60] sm:$0xff]  ;;  %v774_v8 = vld [vmem:[#allocation10 + $0x68] sm:$0xff]  ;;  %v775_v10 = vld [vmem:[#allocation10 + $0x70] sm:$0xff] }
  0xda   : > { %1963 = vmatprep.subr.bf16.mxu0 %v1962_v25  ;;  %v2034_v9 = vpack.c.bf16 %v774_v8, %v773_v7  ;;  %v776_v11 = vld [vmem:[#allocation10 + $0x78] sm:$0xff] }
  0xdb   : > { %v2038_v12 = vpack.c.bf16 %v776_v11, %v775_v10  ;;  %v1568_v13 = vld [vmem:[%s3128_s2] ss:$0 sm:$0xff] }
  0xdc   : > { %1993 = vmatpush3.bf16.msra.mxu1 %v1990_v30  ;;  %v1569_v26 = vld [vmem:[%s3130_s4] ss:$0 sm:$0xff] }
  0xdd   : > { %1965 = vmatpush3.bf16.msra.mxu0 %v1962_v25  ;;  %1995 = vmatprep.subr.bf16.mxu1 %v1994_v36 }
  0xde   : > { %1967 = vmatprep.subr.bf16.mxu0 %v1966_v31 }
  0xe0   : > { %1997 = vmatpush3.bf16.msra.mxu1 %v1994_v36 }
  0xe1   : > { %1969 = vmatpush3.bf16.msra.mxu0 %v1966_v31  ;;  %1999 = vmatprep.subr.bf16.mxu1 %v1998_v42 }
  0xe2   : > { %1971 = vmatprep.subr.bf16.mxu0 %v1970_v37 }
  0xe4   : > { %2001 = vmatpush3.bf16.msra.mxu1 %v1998_v42 }
  0xe5   : > { %1973 = vmatpush3.bf16.msra.mxu0 %v1970_v37  ;;  %2003 = vmatprep.subr.bf16.mxu1 %v2002_v46  ;;  %v1570_v37 = vld [vmem:[%s3132_s6] ss:$0 sm:$0xff] }
  0xe6   : > { %1975 = vmatprep.subr.bf16.mxu0 %v1974_v43 }
  0xe8   : > { %2005 = vmatpush3.bf16.msra.mxu1 %v2002_v46 }
  0xe9   : > { %1977 = vmatpush3.bf16.msra.mxu0 %v1974_v43  ;;  %2007 = vmatprep.subr.bf16.mxu1 %v2006_v52 }
  0xea   : > { %2011 = vmatprep.subr.bf16.mxu0 %v2010_v56 }
  0xec   : > { %1751 = vmatmul.mubr.f32.vlgmr.msra.gmra.mrb[0].mxu0 %v538_v47  ;;  %2009 = vmatpush3.bf16.msra.mxu1 %v2006_v52 }
  0xed   : > { %1753 = vmatprep.mubr.f32.mxu0 %v539_v48  ;;  %2043 = vmatprep.subr.bf16.mxu1 %v2010_v56  ;;  %v877_v48 = vlaneseq }
  0xf0   : > { %1754 = vmatmul.mubr.f32.gmra.mrb[2].mxu0 %v540_v49  ;;  %v2973_v49 = vand.u32 127, %v877_v48 }
  0xf2   : > { %2013 = vmatpush3.bf16.xpose.msra.mxu0 %v2010_v56 }
  0xf3   : > { %2015 = vmatprep.subr.bf16.mxu0 %v2014_v58 }
  0xfa   : > { %2017 = vmatpush3.bf16.xpose.msra.mxu0 %v2014_v58 }
  0xfb   : > { %2019 = vmatprep.subr.bf16.mxu0 %v2018_v61 }
 0x102   : > { %2021 = vmatpush3.bf16.xpose.msra.mxu0 %v2018_v61 }
 0x103   : > { %2023 = vmatprep.subr.bf16.mxu0 %v2022_v0 }
 0x10a   : > { %2025 = vmatpush3.bf16.xpose.msra.mxu0 %v2022_v0 }
 0x10b   : > { %2027 = vmatprep.subr.bf16.mxu0 %v2026_v3 }
 0x112   : > { %2029 = vmatpush3.bf16.xpose.msra.mxu0 %v2026_v3 }
 0x113   : > { %2031 = vmatprep.subr.bf16.mxu0 %v2030_v6 }
 0x11a   : > { %2033 = vmatpush3.bf16.xpose.msra.mxu0 %v2030_v6 }
 0x11b   : > { %2035 = vmatprep.subr.bf16.mxu0 %v2034_v9 }
 0x122   : > { %2037 = vmatpush3.bf16.xpose.msra.mxu0 %v2034_v9 }
 0x123   : > { %2039 = vmatprep.subr.bf16.mxu0 %v2038_v12 }
 0x12a   : > { %2041 = vmatpush3.bf16.xpose.msra.mxu0 %v2038_v12 }
 0x1bf   : > { %v1752_v14 = vpop.f32.mrb[0].mxu0 }
 0x1c0   : > { %v636_v15 = vadd.f32 %v1752_v14, %v1568_v13  ;;  %v630_v16 = vpop.f32.mrb[1].mxu0 }
 0x1c1   : > { %v631_v17 = vadd.f32 %v1568_v13, %v630_v16 }
 0x1c2   : > { %v650_v20 = vmax.f32 %v636_v15, 0.0 }
 0x1c3   : > { %v1755_v18 = vpop.f32.mrb[2].mxu0  ;;  %v649_v19 = vmax.f32 %v631_v17, 0.0 }
 0x1c4   : > { %v646_v21 = vadd.f32 %v1755_v18, %v1568_v13  ;;  %v640_v22 = vpop.f32.mrb[3].mxu0  ;;  %v1120_v18 = vld [vmem:[#allocation12] sm:$0xff] }
 0x1c5   : > { %v641_v23 = vadd.f32 %v1568_v13, %v640_v22  ;;  %1788 = vmatprep.mubr.f32.mxu1 %v649_v19  ;;  %v1121_v19 = vld [vmem:[#allocation12 + $0x8] sm:$0xff] }
 0x1c6   : > { %1789 = vmatmul.mubr.f32.vlgmr.msra.gmra.mrb[0].mxu1 %v650_v20  ;;  %v652_v25 = vmax.f32 %v646_v21, 0.0  ;;  %v2074_v20 = vpack.c.bf16 %v1121_v19, %v1120_v18  ;;  %v1050_v21 = vshrl.u32 %v877_v48, 7  ;;  %v1123_v48 = vld [vmem:[#allocation12 + $0x18] sm:$0xff] }
 0x1c7   : > { %v651_v24 = vmax.f32 %v641_v23, 0.0  ;;  %2045 = vmatpush3.bf16.msra.mxu1 %v2010_v56 }
 0x1c8   : > { %2047 = vmatprep.subr.bf16.mxu1 %v2014_v58  ;;  %v1051_v22 = vadd.s32 8, %v1050_v21 }
 0x1c9   : > { %1791 = vmatprep.mubr.f32.mxu1 %v651_v24  ;;  %v1054_v24 = vstv %s1579_s8 }
 0x1ca   : > { %1792 = vmatmul.mubr.f32.gmra.mrb[2].mxu1 %v652_v25 }
 0x1cb   : > { %2049 = vmatpush3.bf16.msra.mxu1 %v2014_v58 }
 0x1cc   : > { %2051 = vmatprep.subr.bf16.mxu1 %v2018_v61 }
 0x1cf   : > { %2053 = vmatpush3.bf16.msra.mxu1 %v2018_v61 }
 0x1d0   : > { %2055 = vmatprep.subr.bf16.mxu1 %v2022_v0 }
 0x1d3   : > { %2057 = vmatpush3.bf16.msra.mxu1 %v2022_v0 }
 0x1d4   : > { %2059 = vmatprep.subr.bf16.mxu1 %v2026_v3 }
 0x1d7   : > { %2061 = vmatpush3.bf16.msra.mxu1 %v2026_v3 }
 0x1d8   : > { %2063 = vmatprep.subr.bf16.mxu1 %v2030_v6 }
 0x1db   : > { %2065 = vmatpush3.bf16.msra.mxu1 %v2030_v6 }
 0x1dc   : > { %2067 = vmatprep.subr.bf16.mxu1 %v2034_v9 }
 0x1df   : > { %2069 = vmatpush3.bf16.msra.mxu1 %v2034_v9 }
 0x1e0   : > { %2071 = vmatprep.subr.bf16.mxu1 %v2038_v12 }
 0x1e3   : > { %2073 = vmatpush3.bf16.msra.mxu1 %v2038_v12 }
 0x1e4   : > { %2075 = vmatprep.subr.bf16.mxu1 %v2074_v20 }
 0x299   : > { %v1790_v27 = vpop.f32.mrb[0].mxu1 }
 0x29a   : > { %v742_v28 = vpop.f32.mrb[1].mxu1  ;;  %v2960_v30 = vadd.f32 %v1790_v27, %v1569_v26 }
 0x29b   : > { %v2958_v29 = vadd.f32 %v1569_v26, %v742_v28 }
 0x29d   : > { %v1793_v31 = vpop.f32.mrb[2].mxu1  ;;  %1826 = vmatprep.mubr.f32.mxu0 %v2958_v29 }
 0x29e   : > { %v752_v32 = vpop.f32.mrb[3].mxu1  ;;  %1827 = vmatmul.mubr.f32.vlgmr.msra.gmra.mrb[4].mxu0 %v2960_v30  ;;  %v2966_v34 = vadd.f32 %v1793_v31, %v1569_v26  ;;  %v1056_v31 = vadd.s32 %v1054_v24, %v1051_v22 }
 0x29f   : > { %v2964_v33 = vadd.f32 %v1569_v26, %v752_v32  ;;  %v1052_v26 = vadd.s32 16, %v1050_v21  ;;  %v1055_v32 = vadd.s32 %v1054_v24, %v1050_v21 }
 0x2a0   : > { %vm1060_vm9 = vcmp.lt.s32.totalorder %v1056_v31, 48 }
 0x2a1   : > { %1829 = vmatprep.mubr.f32.mxu0 %v2964_v33  ;;  %vm1059_vm10 = vcmp.lt.s32.totalorder %v1055_v32, 48  ;;  %v1104_v32 = vld [vmem:[#allocation3] sm:$0x1] }
 0x2a2   : > { %1830 = vmatmul.mubr.f32.gmra.mrb[6].mxu0 %v2966_v34 }
 0x371   : > { %v1828_v35 = vpop.f32.mrb[4].mxu0 }
 0x372   : > { %v843_v36 = vpop.f32.mrb[5].mxu0  ;;  %v864_v39 = vmul.f32 2.0, %v1828_v35 }
 0x373   : > { %v863_v38 = vmul.f32 2.0, %v843_v36 }
 0x374   : > { %v874_v45 = vsub.f32 %v1570_v37, %v864_v39 }
 0x375   : > { %v1831_v40 = vpop.f32.mrb[6].mxu0  ;;  %v873_v41 = vsub.f32 %v1570_v37, %v863_v38 }
 0x376   : > { %v853_v42 = vpop.f32.mrb[7].mxu0  ;;  %v866_v44 = vmul.f32 2.0, %v1831_v40 }
 0x377   : > { %v865_v43 = vmul.f32 2.0, %v853_v42  ;;  %879 = vmin.xlane.f32.xlu0 %v873_v41 }
 0x378   : > { %v876_v47 = vsub.f32 %v1570_v37, %v866_v44 }
 0x379   : > { %v875_v46 = vsub.f32 %v1570_v37, %v865_v43  ;;  %v1053_v37 = vadd.s32 24, %v1050_v21  ;;  %v1131_v21 = vld [vmem:[#allocation12 + $0x58] sm:$0xff] }
 0x37b   : > { %881 = vmin.xlane.f32.xlu0 %v874_v45  ;;  %883 = vmin.xlane.f32.xlu1 %v875_v46 }
 0x37f   : > { %885 = vmin.xlane.f32.xlu1 %v876_v47 }
 0x404   : > { %v880_v50 = vpop.xlane.xlu0 %879 }
 0x405   : > { %vm887_vm1 = vcmp.eq.f32.partialorder %v873_v41, %v880_v50  ;;  %v1057_v41 = vadd.s32 %v1054_v24, %v1052_v26  ;;  %v1058_v50 = vadd.s32 %v1054_v24, %v1053_v37  ;;  %v1133_v26 = vld [vmem:[#allocation12 + $0x68] sm:$0xff] }
 0x406   : > { %v891_v51 = vsel %vm887_vm1, %v2973_v49, 128  ;;  %vm1102_vm1 = vcmask 0  }
 0x407   : > { %v896_v52 = vshra.s32 %v891_v51, 16  ;;  %v895_v2 = vand.u32 65535, %v891_v51  ;;  %v2595_v51 = vmov 1.0   ;;  %vm1061_vm12 = vcmp.lt.s32.totalorder %v1057_v41, 48 }
 0x408   : > { %v882_v53 = vpop.xlane.xlu0 %881  ;;  %v884_v54 = vpop.xlane.xlu1 %883  ;;  %vm1062_vm15 = vcmp.lt.s32.totalorder %v1058_v50, 48 }
 0x409   : > { %vm888_vm2 = vcmp.eq.f32.partialorder %v874_v45, %v882_v53  ;;  %vm889_vm3 = vcmp.eq.f32.partialorder %v875_v46, %v884_v54  ;;  %v898_v55 = vcvt.s32.f32 %v896_v52  ;;  %v897_v6 = vcvt.s32.f32 %v895_v2 }
 0x40a   : > { %v892_v56 = vsel %vm888_vm2, %v2973_v49, 128  ;;  %v893_v57 = vsel %vm889_vm3, %v2973_v49, 128  ;;  %vm1360_vm2 = vcmask (!%p1586_p3), 1040384  }
 0x40b   : > { %899 = vmin.xlane.f32.xlu0 %v898_v55  ;;  %v910_v58 = vshra.s32 %v892_v56, 16  ;;  %v924_v59 = vshra.s32 %v893_v57, 16  ;;  %v909_v3 = vand.u32 65535, %v892_v56  ;;  %v923_v4 = vand.u32 65535, %v893_v57 }
 0x40c   : > { %v886_v60 = vpop.xlane.xlu1 %885  ;;  %v2596_v57 = vmov 0.0  }
 0x40d   : > { %vm890_vm4 = vcmp.eq.f32.partialorder %v876_v47, %v886_v60  ;;  %v912_v61 = vcvt.s32.f32 %v910_v58  ;;  %v926_v62 = vcvt.s32.f32 %v924_v59  ;;  %v925_v11 = vcvt.s32.f32 %v923_v4  ;;  %v1122_v47 = vld [vmem:[#allocation12 + $0x10] sm:$0xff] }
 0x40e   : > { %v894_v63 = vsel %vm890_vm4, %v2973_v49, 128  ;;  %v911_v12 = vcvt.s32.f32 %v909_v3  ;;  %v2078_v56 = vpack.c.bf16 %v1123_v48, %v1122_v47  ;;  %v2982_v58 = vsel %vm1060_vm9, 1.0, %v2596_v57 }
 0x40f   : > { %913 = vmin.xlane.f32.xlu1 %v912_v61  ;;  %927 = vmin.xlane.f32.xlu0 %v926_v62  ;;  %v938_v0 = vshra.s32 %v894_v63, 16  ;;  %v937_v8 = vand.u32 65535, %v894_v63  ;;  %v2985_v60 = vsel %vm1059_vm10, 1.0, %v2596_v57  ;;  %v1125_v63 = vld [vmem:[#allocation12 + $0x28] sm:$0xff]  ;;  %v2990_v2 = vsel %vm1061_vm12, 1.0, %v2596_v57 }
 0x411   : > { %v940_v1 = vcvt.s32.f32 %v938_v0  ;;  %v939_v16 = vcvt.s32.f32 %v937_v8  ;;  %v1126_v8 = vld [vmem:[#allocation12 + $0x30] sm:$0xff] }
 0x413   : > { %941 = vmin.xlane.f32.xlu1 %v940_v1 }
 0x498   : > { %v900_v5 = vpop.xlane.xlu0 %899 }
 0x499   : > { %vm901_vm5 = vcmp.eq.f32.partialorder %v898_v55, %v900_v5  ;;  %v906_v23 = vcvt.f32.s32 %v900_v5 }
 0x49a   : > { %v902_v7 = vsel %vm901_vm5, %v897_v6, inf }
 0x49b   : > { %903 = vmin.xlane.f32.xlu0 %v902_v7  ;;  %v907_v35 = vshll.u32 %v906_v23, 16  ;;  %v2994_v7 = vsel %vm1062_vm15, 1.0, %v2596_v57 }
 0x49c   : > { %v928_v9 = vpop.xlane.xlu0 %927  ;;  %v914_v10 = vpop.xlane.xlu1 %913 }
 0x49d   : > { %vm929_vm6 = vcmp.eq.f32.partialorder %v926_v62, %v928_v9  ;;  %vm915_vm7 = vcmp.eq.f32.partialorder %v912_v61, %v914_v10  ;;  %v934_v25 = vcvt.f32.s32 %v928_v9  ;;  %v920_v27 = vcvt.f32.s32 %v914_v10  ;;  %v1124_v62 = vld [vmem:[#allocation12 + $0x20] sm:$0xff]  ;;  %v1127_v9 = vld [vmem:[#allocation12 + $0x38] sm:$0xff] }
 0x49e   : > { %v930_v13 = vsel %vm929_vm6, %v925_v11, inf  ;;  %v916_v14 = vsel %vm915_vm7, %v911_v12, inf  ;;  %v2082_v6 = vpack.c.bf16 %v1125_v63, %v1124_v62  ;;  %v1240_v63 = vld [vmem:[#allocation13 + $0x40] sm:$0xff] }
 0x49f   : > { %931 = vmin.xlane.f32.xlu0 %v930_v13  ;;  %917 = vmin.xlane.f32.xlu1 %v916_v14  ;;  %v935_v38 = vshll.u32 %v934_v25, 16  ;;  %v921_v42 = vshll.u32 %v920_v27, 16  ;;  %v1132_v25 = vld [vmem:[#allocation12 + $0x60] sm:$0xff] }
 0x4a0   : > { %v942_v15 = vpop.xlane.xlu1 %941  ;;  %v2098_v31 = vpack.c.bf16 %v1133_v26, %v1132_v25 }
 0x4a1   : > { %vm943_vm8 = vcmp.eq.f32.partialorder %v940_v1, %v942_v15  ;;  %v948_v39 = vcvt.f32.s32 %v942_v15  ;;  %v2086_v15 = vpack.c.bf16 %v1127_v9, %v1126_v8  ;;  %v1245_v8 = vld [vmem:[#allocation13 + $0x68] sm:$0xff] }
 0x4a2   : > { %v944_v17 = vsel %vm943_vm8, %v939_v16, inf  ;;  %v1128_v16 = vld [vmem:[#allocation12 + $0x40] sm:$0xff] }
 0x4a3   : > { %945 = vmin.xlane.f32.xlu1 %v944_v17  ;;  %v949_v52 = vshll.u32 %v948_v39, 16  ;;  %v1129_v17 = vld [vmem:[#allocation12 + $0x48] sm:$0xff] }
 0x528   : > { %v904_v28 = vpop.xlane.xlu0 %903 }
 0x529   : > { %v905_v36 = vcvt.f32.s32 %v904_v28 }
 0x52b   : > { %v908_v40 = vadd.s32 %v907_v35, %v905_v36  ;;  %v1134_v35 = vld [vmem:[#allocation12 + $0x70] sm:$0xff]  ;;  %v1135_v36 = vld [vmem:[#allocation12 + $0x78] sm:$0xff] }
 0x52c   : > { %v932_v43 = vpop.xlane.xlu0 %931  ;;  %v918_v44 = vpop.xlane.xlu1 %917  ;;  %v2102_v39 = vpack.c.bf16 %v1135_v36, %v1134_v35 }
 0x52d   : > { %v933_v45 = vcvt.f32.s32 %v932_v43  ;;  %v919_v46 = vcvt.f32.s32 %v918_v44  ;;  %vm951_vm11 = vcmp.eq.s32.totalorder %v2973_v49, %v908_v40 }
 0x52e   : > { %1864 = vmatprep.mubr.msk.f32.mxu1 %vm951_vm11, %v2595_v51  ;;  %v1571_v59 = vsel %vm951_vm11, 1.0, %v2596_v57 }
 0x52f   : > { %v936_v53 = vadd.s32 %v935_v38, %v933_v45  ;;  %v922_v54 = vadd.s32 %v921_v42, %v919_v46  ;;  %v1105_v5 = vmul.f32 %v2985_v60, %v1571_v59  ;;  %v1237_v59 = vld [vmem:[#allocation13 + $0x28] sm:$0xff] }
 0x530   : > { %v946_v55 = vpop.xlane.xlu1 %945 }
 0x531   : > { %vm952_vm13 = vcmp.eq.s32.totalorder %v2973_v49, %v922_v54  ;;  %v947_v61 = vcvt.f32.s32 %v946_v55  ;;  %vm953_vm14 = vcmp.eq.s32.totalorder %v2973_v49, %v936_v53  ;;  %v1234_v53 = vld [vmem:[#allocation13 + $0x10] sm:$0xff]  ;;  %v1235_v55 = vld [vmem:[#allocation13 + $0x18] sm:$0xff] }
 0x532   : > { %1865 = vmatmul.mubr.msk.f32.vlgmr.msra.gmra.mrb[4].mxu1 %vm952_vm13, %v2595_v51  ;;  %v1572_v0 = vsel %vm952_vm13, 1.0, %v2596_v57  ;;  %v1573_v1 = vsel %vm953_vm14, 1.0, %v2596_v57 }
 0x533   : > { %v950_v3 = vadd.s32 %v949_v52, %v947_v61  ;;  %1867 = vmatprep.mubr.msk.f32.mxu1 %vm953_vm14, %v2595_v51  ;;  %2077 = vmatpush3.bf16.msra.mxu1 %v2074_v20  ;;  %v1106_v4 = vmul.f32 %v2982_v58, %v1572_v0  ;;  %v1107_v11 = vmul.f32 %v2990_v2, %v1573_v1  ;;  %v1130_v20 = vld [vmem:[#allocation12 + $0x50] sm:$0xff]  ;;  %v1239_v61 = vld [vmem:[#allocation13 + $0x38] sm:$0xff]  ;;  %v1241_v0 = vld [vmem:[#allocation13 + $0x48] sm:$0xff] }
 0x534   : > { %2079 = vmatprep.subr.bf16.mxu1 %v2078_v56  ;;  %v2094_v24 = vpack.c.bf16 %v1131_v21, %v1130_v20  ;;  %v2122_v1 = vpack.c.bf16 %v1241_v0, %v1240_v63 }
 0x535   : > { %vm954_vm0 = vcmp.eq.s32.totalorder %v2973_v49, %v950_v3  ;;  %v1109_v10 = vadd.f32 %v1106_v4, %v1105_v5  ;;  %v2090_v49 = vpack.c.bf16 %v1129_v17, %v1128_v16  ;;  %v1242_v3 = vld [vmem:[#allocation13 + $0x50] sm:$0xff]  ;;  %v1243_v4 = vld [vmem:[#allocation13 + $0x58] sm:$0xff] }
 0x536   : > { %1868 = vmatmul.mubr.msk.f32.gmra.mrb[6].mxu1 %vm954_vm0, %v2595_v51  ;;  %v1574_v12 = vsel %vm954_vm0, 1.0, %v2596_v57  ;;  %v1236_v57 = vld [vmem:[#allocation13 + $0x20] sm:$0xff]  ;;  %v2126_v5 = vpack.c.bf16 %v1243_v4, %v1242_v3 }
 0x537   : > { %2081 = vmatpush3.bf16.msra.mxu1 %v2078_v56  ;;  %v1108_v13 = vmul.f32 %v2994_v7, %v1574_v12  ;;  %v1110_v14 = vadd.f32 %v1109_v10, %v1107_v11  ;;  %v2110_v56 = vpack.c.bf16 %v1235_v55, %v1234_v53  ;;  %v1246_v10 = vld [vmem:[#allocation13 + $0x70] sm:$0xff]  ;;  %v1247_v11 = vld [vmem:[#allocation13 + $0x78] sm:$0xff] }
 0x538   : > { %2083 = vmatprep.subr.bf16.mxu1 %v2082_v6  ;;  %v2134_v12 = vpack.c.bf16 %v1247_v11, %v1246_v10 }
 0x539   : > { %v1111_v18 = vadd.f32 %v1110_v14, %v1108_v13 }
 0x53b   : > { %2085 = vmatpush3.bf16.msra.mxu1 %v2082_v6  ;;  %v1112_v19 = vrot.slane %v1111_v18, 4  ;;  %v1244_v6 = vld [vmem:[#allocation13 + $0x60] sm:$0xff] }
 0x53c   : > { %2087 = vmatprep.subr.bf16.mxu1 %v2086_v15  ;;  %v2130_v9 = vpack.c.bf16 %v1245_v8, %v1244_v6 }
 0x53d   : > { %v1113_v22 = vadd.f32 %v1112_v19, %v1111_v18 }
 0x53f   : > { %2089 = vmatpush3.bf16.msra.mxu1 %v2086_v15  ;;  %v1114_v23 = vrot.slane %v1113_v22, 2 }
 0x540   : > { %2091 = vmatprep.subr.bf16.mxu1 %v2090_v49 }
 0x541   : > { %v1115_v27 = vadd.f32 %v1114_v23, %v1113_v22 }
 0x543   : > { %2093 = vmatpush3.bf16.msra.mxu1 %v2090_v49  ;;  %v1116_v28 = vrot.slane %v1115_v27, 1 }
 0x544   : > { %2095 = vmatprep.subr.bf16.mxu1 %v2094_v24 }
 0x545   : > { %v1117_v37 = vadd.f32 %v1116_v28, %v1115_v27  ;;  %v1087_v28 = vld [vmem:[#allocation2] sm:$0x1] }
 0x547   : > { %2097 = vmatpush3.bf16.msra.mxu1 %v2094_v24  ;;  %v1118_v38 = vadd.f32 %v1117_v37, %v1104_v32 }
 0x548   : > { %2099 = vmatprep.subr.bf16.mxu1 %v2098_v31 }
 0x549   : > { %1119 = vst [vmem:[#allocation3] sm:$0x1] %v1118_v38 }
 0x54b   : > { %2101 = vmatpush3.bf16.msra.mxu1 %v2098_v31 }
 0x54c   : > { %2103 = vmatprep.subr.bf16.mxu1 %v2102_v39 }
 0x54f   : > { %2105 = vmatpush3.bf16.msra.mxu1 %v2102_v39 }
 0x550   : > { %v1353_v53 = vld [vmem:[#allocation3] sm:$0x1] (!%p1586_p3) }
 0x551   : > { %v1355_v55 = vmul.f32 (!%p1586_p3), 0.020833334, %v1353_v53 }
 0x605   : > { %v1866_v40 = vpop.f32.mrb[4].mxu1 }
 0x606   : > { %v1072_v41 = vsub.f32 %v1866_v40, %v2960_v30  ;;  %v1029_v42 = vpop.f32.mrb[5].mxu1  ;;  %v1232_v30 = vld [vmem:[#allocation13] sm:$0xff] }
 0x607   : > { %v1071_v43 = vsub.f32 %v1029_v42, %v2958_v29  ;;  %1902 = vmatprep.mubr.f32.mxu1 %v1029_v42  ;;  %v1233_v29 = vld [vmem:[#allocation13 + $0x8] sm:$0xff] }
 0x608   : > { %1903 = vmatmul.mubr.f32.vlgmr.msra.gmra.mrb[8].mxu1 %v1866_v40  ;;  %v1076_v44 = vmul.f32 %v1072_v41, %v1072_v41  ;;  %v2106_v54 = vpack.c.bf16 %v1233_v29, %v1232_v30 }
 0x609   : > { %v1869_v45 = vpop.f32.mrb[6].mxu1  ;;  %v1075_v46 = vmul.f32 %v1071_v43, %v1071_v43 }
 0x60a   : > { %v1074_v47 = vsub.f32 %v1869_v45, %v2966_v34  ;;  %1081 = vadd.xlane.f32.xlu1 %v1076_v44  ;;  %v1039_v48 = vpop.f32.mrb[7].mxu1  ;;  %2107 = vmatprep.subr.bf16.mxu0 %v2106_v54  ;;  %v1238_v34 = vld [vmem:[#allocation13 + $0x30] sm:$0xff]  ;;  %v1585_v44 = vld [vmem:[%s3172_s11] ss:$0 sm:$0xff] }
 0x60b   : > { %v1073_v50 = vsub.f32 %v1039_v48, %v2964_v33  ;;  %1079 = vadd.xlane.f32.xlu0 %v1075_v46  ;;  %1905 = vmatprep.mubr.f32.mxu1 %v1039_v48  ;;  %v2114_v33 = vpack.c.bf16 %v1237_v59, %v1236_v57  ;;  %v2118_v62 = vpack.c.bf16 %v1239_v61, %v1238_v34  ;;  %v1356_v57 = vadd.f32 (!%p1586_p3), 1e-10, %v1355_v55 }
 0x60c   : > { %1906 = vmatmul.mubr.f32.gmra.mrb[10].mxu1 %v1869_v45  ;;  %v1078_v51 = vmul.f32 %v1074_v47, %v1074_v47  ;;  %2138 = vmatprep.subr.bf16.mxu1 %v2106_v54 }
 0x60d   : > { %v1077_v52 = vmul.f32 %v1073_v50, %v1073_v50  ;;  %2109 = vmatpush3.bf16.msra.mxu0 %v2106_v54  ;;  %2146 = vmatpush3.bf16.msra.mxu1 %v2106_v54  ;;  %2272 = vlog2.f32 (!%p1586_p3), %v1356_v57 }
 0x60e   : > { %1085 = vadd.xlane.f32.xlu1 %v1078_v51  ;;  %2111 = vmatprep.subr.bf16.mxu0 %v2110_v56 }
 0x60f   : > { %1083 = vadd.xlane.f32.xlu0 %v1077_v52  ;;  %2139 = vmatprep.subr.bf16.mxu1 %v2110_v56 }
 0x611   : > { %2113 = vmatpush3.bf16.msra.mxu0 %v2110_v56  ;;  %2147 = vmatpush3.bf16.msra.mxu1 %v2110_v56 }
 0x612   : > { %2115 = vmatprep.subr.bf16.mxu0 %v2114_v33  ;;  %2140 = vmatprep.subr.bf16.mxu1 %v2114_v33 }
 0x615   : > { %2117 = vmatpush3.bf16.msra.mxu0 %v2114_v33  ;;  %2148 = vmatpush3.bf16.msra.mxu1 %v2114_v33 }
 0x616   : > { %2119 = vmatprep.subr.bf16.mxu0 %v2118_v62  ;;  %2141 = vmatprep.subr.bf16.mxu1 %v2118_v62 }
 0x617   : > { %v2273_v59 = vpop.eup (!%p1586_p3), %2272 }
 0x618   : > { %v1358_v33 = vmul.f32 (!%p1586_p3), 0.6931472, %v2273_v59 }
 0x619   : > { %2121 = vmatpush3.bf16.msra.mxu0 %v2118_v62  ;;  %2149 = vmatpush3.bf16.msra.mxu1 %v2118_v62 }
 0x61a   : > { %2123 = vmatprep.subr.bf16.mxu0 %v2122_v1  ;;  %2142 = vmatprep.subr.bf16.mxu1 %v2122_v1  ;;  %v1359_v34 = vmul.f32 (!%p1586_p3), %v1358_v33, %v1355_v55 }
 0x61c   : > { %v1361_v61 = vsel (!%p1586_p3), %vm1360_vm2, %v1359_v34, 0.0 }
 0x61d   : > { %2125 = vmatpush3.bf16.msra.mxu0 %v2122_v1  ;;  %2150 = vmatpush3.bf16.msra.mxu1 %v2122_v1 }
 0x61e   : > { %2127 = vmatprep.subr.bf16.mxu0 %v2126_v5  ;;  %2143 = vmatprep.subr.bf16.mxu1 %v2126_v5 }
 0x61f   : > { %1362 = vadd.xlane.f32.xlu0 (!%p1586_p3), %v1361_v61 }
 0x621   : > { %2129 = vmatpush3.bf16.msra.mxu0 %v2126_v5  ;;  %2151 = vmatpush3.bf16.msra.mxu1 %v2126_v5 }
 0x622   : > { %2131 = vmatprep.subr.bf16.mxu0 %v2130_v9  ;;  %2144 = vmatprep.subr.bf16.mxu1 %v2130_v9 }
 0x625   : > { %2133 = vmatpush3.bf16.msra.mxu0 %v2130_v9  ;;  %2152 = vmatpush3.bf16.msra.mxu1 %v2130_v9 }
 0x626   : > { %2135 = vmatprep.subr.bf16.mxu0 %v2134_v12  ;;  %2145 = vmatprep.subr.bf16.mxu1 %v2134_v12 }
 0x629   : > { %2137 = vmatpush3.bf16.msra.mxu0 %v2134_v12  ;;  %2153 = vmatpush3.bf16.msra.mxu1 %v2134_v12 }
 0x697   : > { %v1082_v13 = vpop.xlane.xlu1 %1081 }
 0x698   : > { %v1080_v14 = vpop.xlane.xlu0 %1079  ;;  %v1089_v15 = vmul.f32 %v2982_v58, %v1082_v13 }
 0x699   : > { %v1088_v16 = vmul.f32 %v2985_v60, %v1080_v14  ;;  %v1584_v60 = vld [vmem:[%s3171_s17] ss:$0 sm:$0xff] }
 0x69b   : > { %v1086_v17 = vpop.xlane.xlu1 %1085  ;;  %v1092_v19 = vadd.f32 %v1089_v15, %v1088_v16 }
 0x69c   : > { %v1084_v18 = vpop.xlane.xlu0 %1083  ;;  %v1091_v20 = vmul.f32 %v2994_v7, %v1086_v17 }
 0x69d   : > { %v1090_v49 = vmul.f32 %v2990_v2, %v1084_v18 }
 0x69f   : > { %v1093_v21 = vadd.f32 %v1092_v19, %v1090_v49 }
 0x6a1   : > { %v1094_v22 = vadd.f32 %v1093_v21, %v1091_v20 }
 0x6a3   : > { %v1095_v23 = vrot.slane %v1094_v22, 4 }
 0x6a5   : > { %v1096_v24 = vadd.f32 %v1095_v23, %v1094_v22 }
 0x6a7   : > { %v1097_v25 = vrot.slane %v1096_v24, 2 }
 0x6a9   : > { %v1098_v26 = vadd.f32 %v1097_v25, %v1096_v24 }
 0x6ab   : > { %v1099_v27 = vrot.slane %v1098_v26, 1 }
 0x6ac   : > { %v1363_v62 = vpop.xlane.xlu0 (!%p1586_p3), %1362 }
 0x6ad   : > { %v1100_v31 = vadd.f32 %v1099_v27, %v1098_v26  ;;  %v1364_v63 = vsub.f32 (!%p1586_p3), 0.0, %v1363_v62 }
 0x6af   : > { %v1101_v58 = vadd.f32 %v1100_v31, %v1087_v28  ;;  %v1365_v0 = vmul.f32 (!%p1586_p3), 1.442695, %v1364_v63 }
 0x6b1   : > { %1103 = vst.msk [vmem:[#allocation2] sm:$0x1] %vm1102_vm1, %v1101_v58  ;;  %2274 = vpow2.f32 (!%p1586_p3), %v1365_v0 }
 0x6b8   : > { %v1348_v29 = vld [vmem:[#allocation2] sm:$0x1] (!%p1586_p3) }
 0x6b9   : > { %v1350_v54 = vmul.f32 (!%p1586_p3), 0.0026041667, %v1348_v29 }
 0x6bb   : > { %v1351_v56 = vmul.f32 (!%p1586_p3), 1.25, %v1350_v54  ;;  %v2275_v1 = vpop.eup (!%p1586_p3), %2274 }
 0x6bc   : > { %1367 = vst.msk [vmem:[#allocation18] sm:$0x1] (!%p1586_p3), %vm1102_vm1, %v2275_v1 }
 0x6bd   : > { %1352 = vst.msk [vmem:[#allocation15] sm:$0x1] (!%p1586_p3), %vm1102_vm1, %v1351_v56 }
 0x6db   : > { %v1904_v2 = vpop.f32.mrb[8].mxu1 }
 0x6dc   : > { %v1215_v32 = vadd.f32 %v1904_v2, %v1584_v60  ;;  %v1209_v7 = vpop.f32.mrb[9].mxu1 }
 0x6dd   : > { %v1210_v35 = vadd.f32 %v1584_v60, %v1209_v7 }
 0x6de   : > { %v1229_v38 = vmax.f32 %v1215_v32, 0.0 }
 0x6df   : > { %v1228_v36 = vmax.f32 %v1210_v35, 0.0  ;;  %v1907_v37 = vpop.f32.mrb[10].mxu1 }
 0x6e0   : > { %v1225_v39 = vadd.f32 %v1907_v37, %v1584_v60  ;;  %v1219_v40 = vpop.f32.mrb[11].mxu1 }
 0x6e1   : > { %v1220_v41 = vadd.f32 %v1584_v60, %v1219_v40  ;;  %1940 = vmatprep.mubr.f32.mxu0 %v1228_v36 }
 0x6e2   : > { %1941 = vmatmul.mubr.f32.vlgmr.msra.gmra.mrb[8].mxu0 %v1229_v38  ;;  %v1231_v43 = vmax.f32 %v1225_v39, 0.0 }
 0x6e3   : > { %v1230_v42 = vmax.f32 %v1220_v41, 0.0 }
 0x6e5   : > { %1943 = vmatprep.mubr.f32.mxu1 %v1230_v42 }
 0x6e6   : > { %1944 = vmatmul.mubr.f32.vlgmr.msra.gmra.mrb[12].mxu1 %v1231_v43 }
 0x7b5   : > { %v1942_v45 = vpop.f32.mrb[8].mxu0 }
 0x7b6   : > { %v1327_v46 = vadd.f32 %v1942_v45, %v1585_v44  ;;  %v1321_v47 = vpop.f32.mrb[9].mxu0 }
 0x7b7   : > { %v1322_v48 = vadd.f32 %v1585_v44, %v1321_v47  ;;  %1347 = sbr.rel (%p1586_p3) target bundleno = 1982 (0x7be), region = 96 }
 0x7b8   : > { %1341 = vst [vmem:[%s2944_s15 + $0x8] sm:$0xff] %v1327_v46 }
 0x7b9   : > { %1340 = vst [vmem:[%s2944_s15] sm:$0xff] %v1322_v48  ;;  %v1945_v50 = vpop.f32.mrb[12].mxu1 }
 0x7ba   : > { %v1337_v51 = vadd.f32 %v1945_v50, %v1585_v44  ;;  %v1331_v52 = vpop.f32.mrb[13].mxu1 }
 0x7bb   : > { %v1332_v30 = vadd.f32 %v1585_v44, %v1331_v52 }
 0x7bc   : > { %1343 = vst [vmem:[%s2944_s15 + $0x18] sm:$0xff] %v1337_v51 }
 0x7bd   : > { %1342 = vst [vmem:[%s2944_s15 + $0x10] sm:$0xff] %v1332_v30 }
 0x7be PF: > { %s1368_s24 = sand.u32 1, %s2693_s14   ;;  %s1597_s22 = sshll.u32 %s2693_s14, 9 }
 0x7bf   : > { %s3173_s30 = sld [smem:[#allocation30_spill]]  ;;  %s1393_s1 = sshll.u32 %s2944_s15, 4  ;;  %s3029_s1 = int_to_ptr.vmem [resolvable:$true] %s1393_s1 }
 0x7c0   : > { %s3031_s8 = scalar_lea.sflag [#allocation17], %s1368_s24  ;;  %s2446_s29 = scalar_lea.vmem %s3029_s1, 512 }
 0x7c1   : > { %p2447_p12 = scmp.ne.s32.totalorder %s3029_s1, %s2446_s29  ;;  %p3174_p1 = scmp.ne.s32.totalorder %s3160_s23, 0 }
 0x7c2   : > { %s2597_s19 = smov [#allocation16]  }
 0x7c3   : > { %p2448_p13 = pnand %p2447_p12, %p3174_p1  ;;  %s2450_s17 = sshll.u32 %s2597_s19, 4  ;;  %s2451_s17 = int_to_ptr.vmem [resolvable:$false] %s2450_s17 }
 0x7c4   : > { %s2452_s18 = scalar_lea.vmem %s2451_s17, 1024  ;;  %p2453_p6 = scmp.lt.s32.totalorder %s3029_s1, %s2451_s17 }
 0x7c5   : > { %s3026_s20 = scalar_lea.hbm %s3173_s30, %s1597_s22  ;;  %p2449_p2 = pneg %p2448_p13 }
 0x7c6   : > { %p2454_p0 = scmp.lt.s32.totalorder %s2452_s18, %s2446_s29 }
 0x7c8   : > { %p2455_p7 = por %p2454_p0, %p2453_p6 }
 0x7ca   : > { %p2456_p5 = pnand %p2455_p7, %p2449_p2 }
 0x7cc   : > { %2459 = shalt.err (!%p2456_p5)
}
 0x7cd   : > { %s2460_s15 = scalar_lea.hbm %s3026_s20, 512  ;;  %s2464_s24 = scalar_lea.hbm %s3173_s30, 1024 }
 0x7ce   : > { %p2461_p11 = scmp.ne.s32.totalorder %s3026_s20, %s2460_s15  ;;  %p2465_p10 = scmp.lt.u32.totalorder %s3026_s20, %s3173_s30 }
 0x7cf   : > { %p2466_p8 = scmp.lt.u32.totalorder %s2464_s24, %s2460_s15  ;;  %p2468_p12 = scmp.lt.u32.totalorder %s2460_s15, %s3026_s20 }
 0x7d0   : > { %p2462_p9 = pnand %p2461_p11, %p3174_p1 }
 0x7d1   : > { %p2467_p3 = por %p2466_p8, %p2465_p10 }
 0x7d2   : > { %p2463_p4 = pneg %p2462_p9 }
 0x7d3   : > { %p2469_p13 = por %p2468_p12, %p2467_p3 }
 0x7d5   : > { %p2470_p2 = pnand %p2469_p13, %p2463_p4 }
 0x7d7   : > { %2473 = shalt.err (!%p2470_p2)
}
 0x7d8   : > { %s2598_s12 = smov 128   ;;  %s2599_s29 = smov 8  }
 0x7d9   : > { %2178 = dma.vmem_to_hbm [thread:$0]  (%p3174_p1), %s3029_s1, 512, %s3026_s20, %s3031_s8, %s2598_s12, %s2598_s12, %s2599_s29  }
 0x7da   : > { %s2600_s19 = smov [#allocation15]   ;;  %s2601_s18 = smov [#allocation18]  }
 0x7db   : > { %s1380_s17 = sshll.u32 %s2600_s19, 4  ;;  %s1407_s21 = sshll.u32 %s2601_s18, 4  ;;  %s1381_s17 = int_to_ptr.vmem [resolvable:$true] %s1380_s17  ;;  %s3055_s21 = int_to_ptr.vmem [resolvable:$true] %s1407_s21 }
 0x7dc   : > { %s2474_s15 = scalar_lea.vmem %s1381_s17, 16  ;;  %p3175_p0 = scmp.eq.s32.totalorder %s2693_s14, 1 }
 0x7dd   : > { %p2475_p6 = scmp.ne.s32.totalorder %s1381_s17, %s2474_s15  ;;  %s2480_s11 = scalar_lea.vmem %s1381_s17, 32 }
 0x7de   : > { %p2481_p11 = scmp.lt.s32.totalorder %s1381_s17, %s1381_s17  ;;  %p2482_p9 = scmp.lt.s32.totalorder %s2480_s11, %s2474_s15 }
 0x7df   : > { %p2476_p7 = pnand %p2475_p6, %p3175_p0 }
 0x7e0   : > { %p2483_p4 = por %p2482_p9, %p2481_p11 }
 0x7e1   : > { %p2477_p5 = pneg %p2476_p7 }
 0x7e3   : > { %p2484_p10 = pnand %p2483_p4, %p2477_p5 }
 0x7e5   : > { %2487 = shalt.err (!%p2484_p10)
}
 0x7e6   : > { %s3176_s1 = sld [smem:[#allocation29_spill]]  ;;  %p3177_p8 = pmov %p3175_p0 }
 0x7ec   : > { %s2488_s8 = scalar_lea.hbm %s3176_s1, 16 }
 0x7ed   : > { %p2489_p1 = scmp.ne.s32.totalorder %s3176_s1, %s2488_s8  ;;  %p2494_p13 = scmp.lt.u32.totalorder %s2488_s8, %s3176_s1 }
 0x7ef   : > { %p2490_p3 = pnand %p2489_p1, %p3177_p8 }
 0x7f1   : > { %p2491_p12 = pneg %p2490_p3 }
 0x7f3   : > { %p2496_p2 = pnand %p2494_p13, %p2491_p12 }
 0x7f5   : > { %2499 = shalt.err (!%p2496_p2)
}
 0x7f6   : > { %p3178_p6 = pmov %p3175_p0  ;;  %s2500_s18 = scalar_lea.vmem %s3055_s21, 16 }
 0x7f7   : > { %p2501_p0 = scmp.ne.s32.totalorder %s3055_s21, %s2500_s18  ;;  %s2506_s15 = scalar_lea.vmem %s3055_s21, 32 }
 0x7f8   : > { %2177 = dma.vmem_to_hbm [thread:$0]  (%p3178_p6), %s1381_s17, 16, %s3176_s1, [#allocation6]  }
 0x7f9   : > { %p3179_p7 = pmov %p3178_p6  ;;  %p2507_p9 = scmp.lt.s32.totalorder %s3055_s21, %s3055_s21 }
 0x7fa   : > { %p2508_p4 = scmp.lt.s32.totalorder %s2506_s15, %s2500_s18 }
 0x7fb   : > { %p2502_p5 = pnand %p2501_p0, %p3179_p7 }
 0x7fc   : > { %p2509_p10 = por %p2508_p4, %p2507_p9 }
 0x7fd   : > { %p2503_p11 = pneg %p2502_p5 }
 0x7ff   : > { %p2510_p1 = pnand %p2509_p10, %p2503_p11 }
 0x801   : > { %2513 = shalt.err (!%p2510_p1)
}
 0x802   : > { %s3180_s20 = sld [smem:[#allocation31_spill]]  ;;  %p3181_p3 = pmov %p3178_p6 }
 0x808   : > { %s2514_s8 = scalar_lea.hbm %s3180_s20, 16 }
 0x809   : > { %p2515_p8 = scmp.ne.s32.totalorder %s3180_s20, %s2514_s8  ;;  %p2520_p2 = scmp.lt.u32.totalorder %s2514_s8, %s3180_s20 }
 0x80b   : > { %p2516_p12 = pnand %p2515_p8, %p3181_p3 }
 0x80d   : > { %p2517_p13 = pneg %p2516_p12 }
 0x80f   : > { %p2522_p6 = pnand %p2520_p2, %p2517_p13 }
 0x811   : > { %2525 = shalt.err (!%p2522_p6)
}
 0x812   : > { %p3182_p0 = pmov %p3181_p3 }
 0x814   : > { %2180 = dma.vmem_to_hbm [thread:$0]  (%p3182_p0), %s3055_s21, 16, %s3180_s20, [#allocation17]  }
 0x815   : > { %p3183_p7 = pmov %p3182_p0 }
 0x816   : > { %p3184_p5 = pmov %p3182_p0 }
 0x817   : > { %2559 = dma.done.wait (%p3183_p7), [#allocation6], 16  }
 0x818   : > { %2561 = vsyncadd (%p3184_p5), [#allocation6], 4294967280  ;;  %p3185_p11 = pmov %p3182_p0 }
 0x819   : > { %p3186_p9 = pmov %p3182_p0 }
 0x81a   : > { %2563 = dma.done.wait (%p3185_p11), [#allocation17], 16  }
 0x81b   : > { %2565 = vsyncadd (%p3186_p9), [#allocation17], 4294967280 }
 0x81c PF: > { %s3187_s19 = sadd.s32 4294967294, %s2584_s28   ;;  %p3188_p4 = scmp.ne.s32.totalorder %s3161_s25, 0 }
 0x81d   : > { %s1427_s18 = sand.u32 1, %s3187_s19   ;;  %p3189_p10 = scmp.ge.s32.totalorder %s2584_s28, 2 }
 0x81e   : > { %s1428_s21 = scalar_lea.sflag [#allocation17], %s1427_s18 }
 0x81f   : > { %p2207_p1 = pnand %p3189_p10, %p3188_p4 }
 0x821   : > { %2567 = dma.done.wait (!%p2207_p1), %s1428_s21, 512  }
 0x822   : > { %2569 = vsyncadd (!%p2207_p1), %s1428_s21, 4294966784  ;;  %p31_p8 = scmp.ge.s32.totalorder %s2846_s16, 4   ;;  %s3190_s25 = smov %s2576_s26 }
 0x823   : > { %s3191_s26 = smov %s2580_s27  ;;  %s3192_s27 = smov %s2858_s10 }
 0x824   : > { %s3193_s28 = smov %s2846_s16  ;;  %33 = sbr.rel (!%p31_p8) target bundleno = 16 (0x10), region = 154 }
 0x82b   :  { %1433 = vsyncpa [#allocation5], 1 }
 0x82c   :  { %1435 = vsyncpa [#allocation5 + $0x1], 1 }
 0x82d   :  { %1436 = vsyncpa [#allocation8], 1 }
 0x82e   :  { %1437 = vsyncpa [#allocation11], 1 }
 0x82f   :  { %1438 = vsyncpa [#allocation14], 1 }
 0x830   :  { %1439 = vsyncpa [#allocation6], 1 }
 0x831   :  { %1441 = vsyncpa [#allocation6 + $0x1], 1 }
 0x832   :  { %1442 = vsyncpa [#allocation17], 1 }
 0x833   :  { %1444 = vsyncpa [#allocation17 + $0x1], 1 }

</bundles_post_ra>
